<compile_context>
chip_gen: v7x
topology: tpu7x:2x2x1
jax: 0.10.0
libtpu: 0.0.40
codegen_flags: <defaults>
</compile_context>

<pallas_src>
import functools

import jax
import jax.numpy as jnp
import numpy as np
from jax import lax
from jax.experimental import pallas as pl
from jax.experimental.pallas import tpu as pltpu

PAD = 0           # ignore_index
_NEG_BIG = -1e30  # mask value for out-of-range vocab columns (never wins the max; exp underflows to 0)


def _round_up(x, m):
    return ((int(x) + m - 1) // m) * m


def _add_loss_kernel(x_ref, w_ref, b_ref, t_ref, loss_ref, acc_ref,
                     m_sc, l_sc, tl_sc, am_sc, *, pad, tile_m, tile_v, n_rows, n_vocab):
    """Grid = (row_blocks [parallel], vocab_blocks [arbitrary]).

    For the current (tile_m, H) row tile and (H, tile_v) weight tile:
      logits = x @ W + b on the MXU (bf16 inputs, f32 accumulation), then one fused
      sweep updating the per-row online logsumexp, the target logit and the running
      first-occurrence argmax.  On the last vocab block the per-row loss / correctness
      is collapsed to a partial scalar for this row block.
    """
    i = pl.program_id(0)
    j = pl.program_id(1)
    nj = pl.num_programs(1)

    @pl.when(j == 0)
    def _():
        m_sc[...] = jnp.full_like(m_sc, -jnp.inf)
        l_sc[...] = jnp.zeros_like(l_sc)
        tl_sc[...] = jnp.zeros_like(tl_sc)
        am_sc[...] = jnp.zeros_like(am_sc)

    # --- the wrapped "module": Linear(H -> V), restricted to this vocab tile ---
    logits = jnp.dot(x_ref[...], w_ref[...], preferred_element_type=jnp.float32)
    logits = logits + b_ref[...]                               # (tile_m, tile_v) f32
    # TODO(synk): bias could be folded into the matmul (ones column on x) to save one VPU sweep.

    # Local (1, tile_v) lane iota -- no (tile_m, tile_v) int32 materialization.
    local_col = lax.broadcasted_iota(jnp.int32, (1, tile_v), 1)
    # Mask the vocab tail: the last vocab block reads unspecified data beyond column n_vocab.
    logits = jnp.where(local_col < (n_vocab - j * tile_v), logits, _NEG_BIG)

    tgt = t_ref[...]                                           # (tile_m, 1) int32
    tgt_local = tgt - j * tile_v                               # target index within this tile

    # --- fused online-softmax / argmax / target-gather sweep over this vocab tile ---
    block_max = jnp.max(logits, axis=-1, keepdims=True)        # (tile_m, 1)
    m_prev = m_sc[...]
    m_new = jnp.maximum(m_prev, block_max)
    p = jnp.exp(logits - m_new)
    l_sc[...] = l_sc[...] * jnp.exp(m_prev - m_new) + jnp.sum(p, axis=-1, keepdims=True)
    # each valid target index falls in exactly one vocab block
    tl_sc[...] += jnp.sum(jnp.where(local_col == tgt_local, logits, 0.0),
                          axis=-1, keepdims=True)
    # first-occurrence argmax within the block; strict '>' keeps earlier blocks on ties
    blk_arg = jnp.min(jnp.where(logits == block_max, local_col, jnp.iinfo(jnp.int32).max),
                      axis=-1, keepdims=True)
    am_sc[...] = jnp.where(block_max > m_prev, blk_arg + j * tile_v, am_sc[...])
    m_sc[...] = m_new

    # --- finalize this row block: collapse to partial scalars once, on the last vocab tile ---
    @pl.when(j == nj - 1)
    def _():
        row = i * tile_m + lax.broadcasted_iota(jnp.int32, (tile_m, 1), 0)
        # rows >= n_rows are unspecified tail reads; rows with target == pad are ignored
        valid = jnp.logical_and(row < n_rows, tgt != pad)
        row_loss = jnp.where(valid, m_sc[...] + jnp.log(l_sc[...]) - tl_sc[...], 0.0)
        correct = jnp.logical_and(am_sc[...] == tgt, valid)
        loss_ref[...] = jnp.full(loss_ref.shape, jnp.sum(row_loss), jnp.float32)
        acc_ref[...] = jnp.full(acc_ref.shape, jnp.sum(correct.astype(jnp.int32)), jnp.int32)


def _vmem_estimate(tile_m, tile_v, H):
    """Itemized per-core VMEM estimate (bytes): double-buffered inputs + f32 temporaries."""
    return (2 * tile_m * H * 2            # x tiles (bf16, 2 buffers)
            + 2 * H * tile_v * 2          # W tiles (bf16, 2 buffers)
            + 2 * 1 * tile_v * 4          # bias tiles (f32, 2 buffers)
            + 2 * tile_m * 128 * 4        # target tiles (lane-padded int32, 2 buffers)
            + 6 * tile_m * tile_v * 4     # logits / exp / select temporaries (f32)
            + 4 * tile_m * 128 * 4        # per-row scratch vectors (lane-padded)
            + 2 * 2 * 8 * 128 * 4)        # partial-output blocks (2 outputs, 2 buffers)


def _pick_tiles(N, H, V, tile_m, tile_v):
    """Per-generation tile sizes and VMEM limit.

    The (H, V) weight is re-DMA'd once per row block, so the weight stream's arithmetic
    intensity equals tile_m bf16-flops/byte.  MXU-bound thresholds: ~650 on v6e
    (918 TF/s vs ~1.4 TB/s HBM), ~620/TC on v7x (3.2 TB/s, 2 TCs), ~240 on v5e.
    """
    try:
        vmem_cap = int(pltpu.get_tpu_info().vmem_capacity_bytes)
    except Exception:
        vmem_cap = 128 * 1024 * 1024
    if vmem_cap <= 64 * 1024 * 1024:
        # v7x-class: 64 MiB per TensorCore -> cap well below physical, tile_m ~ 768.
        budget = (vmem_cap * 7) // 8                              # ~56 MiB
        default_m = 768
    else:
        # v5e / v6e: 128 MiB.  tile_m=1024 makes v6e MXU-bound; on v5e the larger tile
        # is harmless (crossover is already ~240 flops/byte).
        budget = min((vmem_cap * 25) // 32, 100 * 1024 * 1024)    # ~100 MiB
        default_m = 1024

    tile_v = 512 if tile_v is None else int(tile_v)
    tile_v = max(128, _round_up(tile_v, 128))
    tile_v = min(tile_v, _round_up(V, 128))

    tile_m = default_m if tile_m is None else int(tile_m)
    tile_m = max(16, _round_up(tile_m, 16))                       # bf16 (16, 128) sublane packing
    tile_m = min(tile_m, _round_up(N, 16))

    # Keep >= 2 row blocks so the "parallel" row axis shards across v7x's 2 TensorCores.
    if pl.cdiv(N, tile_m) < 2 and N > 512:
        tile_m = max(256, _round_up((N + 1) // 2, 16))

    # Shrink to fit the VMEM budget (1.3x margin on the itemized estimate).
    while _vmem_estimate(tile_m, tile_v, H) * 13 // 10 > budget and tile_m > 256:
        tile_m = max(256, _round_up(tile_m // 2, 16))
    while _vmem_estimate(tile_m, tile_v, H) * 13 // 10 > budget and tile_v > 256:
        tile_v = max(256, _round_up(tile_v // 2, 128))

    vmem_limit = int(min(max(_vmem_estimate(tile_m, tile_v, H) * 13 // 10,
                             32 * 1024 * 1024), budget))
    return tile_m, tile_v, vmem_limit


def add_loss_forward(x, target, w, b, *, pad=PAD, tile_m=None, tile_v=None):
    """x: (B, T, H), target: (B, T) int, w: (H, V) (pre-cast to bf16 once outside the
    training step to avoid a per-step copy), b: (V,) or (1, V).

    Returns (loss (1,1) f32, accuracy (1,1) int32), matching AddLossModule.forward with
    criterion = CrossEntropyLoss(ignore_index=pad, reduction='sum').
    """
    B, T, H = x.shape
    V = w.shape[1]
    N = B * T

    # No padded HBM copies: row / vocab tails are masked in-kernel instead.
    x2 = x.reshape(N, H)
    if x2.dtype != jnp.bfloat16:
        x2 = x2.astype(jnp.bfloat16)       # fuses into the producer under jit
    w2 = w if w.dtype == jnp.bfloat16 else w.astype(jnp.bfloat16)
    b2 = b.reshape(1, V).astype(jnp.float32)
    t2 = target.reshape(N, 1).astype(jnp.int32)

    tile_m, tile_v, vmem_limit = _pick_tiles(N, H, V, tile_m, tile_v)
    g = pl.cdiv(N, tile_m)       # row blocks (parallel)
    vb = pl.cdiv(V, tile_v)      # vocab blocks (reduction)

    loss_part, acc_part = pl.pallas_call(
        functools.partial(_add_loss_kernel, pad=pad, tile_m=tile_m, tile_v=tile_v,
                          n_rows=N, n_vocab=V),
        out_shape=(
            jax.ShapeDtypeStruct((g * 8, 128), jnp.float32),
            jax.ShapeDtypeStruct((g * 8, 128), jnp.int32),
        ),
        grid_spec=pltpu.PrefetchScalarGridSpec(
            num_scalar_prefetch=0,
            grid=(g, vb),
            in_specs=[
                pl.BlockSpec((tile_m, H), lambda i, j: (i, 0)),   # x rows (bf16)
                pl.BlockSpec((H, tile_v), lambda i, j: (0, j)),   # weight vocab tile (bf16)
                pl.BlockSpec((1, tile_v), lambda i, j: (0, j)),   # bias vocab tile (f32)
                pl.BlockSpec((tile_m, 1), lambda i, j: (i, 0)),   # targets
            ],
            out_specs=(
                pl.BlockSpec((8, 128), lambda i, j: (i, 0)),      # partial loss per row block
                pl.BlockSpec((8, 128), lambda i, j: (i, 0)),      # partial accuracy per row block
            ),
            scratch_shapes=[
                pltpu.VMEM((tile_m, 1), jnp.float32),   # running max  m
                pltpu.VMEM((tile_m, 1), jnp.float32),   # running sum-exp  l
                pltpu.VMEM((tile_m, 1), jnp.float32),   # target logit
                pltpu.VMEM((tile_m, 1), jnp.int32),     # running argmax
            ],
        ),
        compiler_params=pltpu.CompilerParams(
            dimension_semantics=("parallel", "arbitrary"),
            vmem_limit_bytes=vmem_limit,
        ),
    )(x2, w2, b2, t2)

    # Each (8,128) output block holds one broadcast partial scalar -> pick one per block, sum.
    loss = jnp.sum(loss_part[0::8, 0]).reshape(1, 1)
    acc = jnp.sum(acc_part[0::8, 0]).reshape(1, 1)
    return loss, acc


def _reference(x, target, w, b, pad=PAD):
    B, T, H = x.shape
    V = w.shape[1]
    logits = (x.reshape(-1, H).astype(jnp.float32) @ w.astype(jnp.float32)
              + b.reshape(1, V).astype(jnp.float32))
    t = target.reshape(-1)
    lse = jax.scipy.special.logsumexp(logits, axis=-1)
    tgt_logit = jnp.take_along_axis(logits, t[:, None], axis=-1)[:, 0]
    valid = t != pad
    loss = jnp.sum(jnp.where(valid, lse - tgt_logit, 0.0)).reshape(1, 1)
    acc = jnp.sum(
        jnp.where(valid, jnp.argmax(logits, axis=-1) == t, False).astype(jnp.int32)
    ).reshape(1, 1)
    return loss, acc


if __name__ == "__main__":
    # Small shapes; chosen so both grid axes and the row/vocab tail-masking paths are
    # exercised (N=200 with tile_m=128 -> 2 row blocks, last block has 56 masked rows;
    # V=300 with tile_v=128 -> 3 vocab blocks, last block has 84 masked columns).
    B, T, H, V = 2, 100, 32, 300

    key = jax.random.PRNGKey(0)
    kx, kt, kw, kb = jax.random.split(key, 4)

    x = jax.random.normal(kx, (B, T, H), dtype=jnp.float32)
    target = jax.random.randint(kt, (B, T), 0, V, dtype=jnp.int32)   # PAD=0 occurs naturally

    # Deterministic "module" parameters (Linear H -> V).
    w = jax.random.normal(kw, (H, V), dtype=jnp.float32) * 0.05
    b = jax.random.normal(kb, (1, V), dtype=jnp.float32) * 0.05

    loss, acc = add_loss_forward(x, target, w, b, tile_m=128, tile_v=128)
    loss, acc = jax.block_until_ready((loss, acc))

    # Reference uses the same bf16-rounded x / w the kernel consumes (f32 accumulation).
    x_r = x.astype(jnp.bfloat16).astype(jnp.float32)
    w_r = w.astype(jnp.bfloat16).astype(jnp.float32)
    ref_loss, ref_acc = _reference(x_r, target, w_r, b)

    np.testing.assert_allclose(np.asarray(loss), np.asarray(ref_loss), rtol=5e-4, atol=1e-2)
    np.testing.assert_array_equal(np.asarray(acc), np.asarray(ref_acc))

    print("KERNEL_OK")
</pallas_src>

<mosaic_0001>
module attributes {stable_mosaic.version = 11 : i64} {
  func.func @_add_loss_kernel(%arg0: i32, %arg1: i32, %arg2: memref<128x32xbf16, #tpu.memory_space<vmem>>, %arg3: memref<32x128xbf16, #tpu.memory_space<vmem>>, %arg4: memref<1x128xf32, #tpu.memory_space<vmem>>, %arg5: memref<128x1xi32, #tpu.memory_space<vmem>>, %arg6: memref<8x128xf32, #tpu.memory_space<vmem>>, %arg7: memref<8x128xi32, #tpu.memory_space<vmem>>, %arg8: memref<128x1xf32, #tpu.memory_space<vmem>>, %arg9: memref<128x1xf32, #tpu.memory_space<vmem>>, %arg10: memref<128x1xf32, #tpu.memory_space<vmem>>, %arg11: memref<128x1xi32, #tpu.memory_space<vmem>>) attributes {dimension_semantics = [#tpu.dimension_semantics<parallel>, #tpu.dimension_semantics<arbitrary>], iteration_bounds = array<i64: 2, 3>, scalar_prefetch = 0 : i64, scratch_operands = 4 : i64, tpu.core_type = #tpu.core_type<tc>, window_params = [{transform_indices = @transform_0, window_bounds = array<i64: 128, 32>}, {transform_indices = @transform_1, window_bounds = array<i64: 32, 128>}, {transform_indices = @transform_2, window_bounds = array<i64: 1, 128>}, {transform_indices = @transform_3, window_bounds = array<i64: 128, 1>}, {transform_indices = @transform_4, window_bounds = array<i64: 8, 128>}, {transform_indices = @transform_5, window_bounds = array<i64: 8, 128>}]} {
    %c0_i32 = arith.constant 0 : i32
    %0 = arith.cmpi eq, %arg1, %c0_i32 : i32
    %1 = arith.extui %0 : i1 to i32
    %c0_i32_0 = arith.constant 0 : i32
    %2 = arith.cmpi ne, %1, %c0_i32_0 : i32
    scf.if %2 {
      %cst_33 = arith.constant 0xFF800000 : f32
      %66 = vector.broadcast %cst_33 : f32 to vector<128x1xf32>
      %c0_34 = arith.constant 0 : index
      %c0_35 = arith.constant 0 : index
      %67 = vector.load %arg8[%c0_34, %c0_35] : memref<128x1xf32, #tpu.memory_space<vmem>>, vector<128x1xf32>
      tpu.vector_store %arg8[%c0_34, %c0_35], %66 {strides = array<i32>} : memref<128x1xf32, #tpu.memory_space<vmem>>, vector<128x1xf32>,
      %cst_36 = arith.constant 0.000000e+00 : f32
      %68 = vector.broadcast %cst_36 : f32 to vector<128x1xf32>
      %c0_37 = arith.constant 0 : index
      %c0_38 = arith.constant 0 : index
      %69 = vector.load %arg9[%c0_37, %c0_38] : memref<128x1xf32, #tpu.memory_space<vmem>>, vector<128x1xf32>
      tpu.vector_store %arg9[%c0_37, %c0_38], %68 {strides = array<i32>} : memref<128x1xf32, #tpu.memory_space<vmem>>, vector<128x1xf32>,
      %cst_39 = arith.constant 0.000000e+00 : f32
      %70 = vector.broadcast %cst_39 : f32 to vector<128x1xf32>
      %c0_40 = arith.constant 0 : index
      %c0_41 = arith.constant 0 : index
      %71 = vector.load %arg10[%c0_40, %c0_41] : memref<128x1xf32, #tpu.memory_space<vmem>>, vector<128x1xf32>
      tpu.vector_store %arg10[%c0_40, %c0_41], %70 {strides = array<i32>} : memref<128x1xf32, #tpu.memory_space<vmem>>, vector<128x1xf32>,
      %c0_i32_42 = arith.constant 0 : i32
      %72 = vector.broadcast %c0_i32_42 : i32 to vector<128x1xi32>
      %c0_43 = arith.constant 0 : index
      %c0_44 = arith.constant 0 : index
      %73 = vector.load %arg11[%c0_43, %c0_44] : memref<128x1xi32, #tpu.memory_space<vmem>>, vector<128x1xi32>
      tpu.vector_store %arg11[%c0_43, %c0_44], %72 {strides = array<i32>} : memref<128x1xi32, #tpu.memory_space<vmem>>, vector<128x1xi32>,
    } else {
    }
    %c0 = arith.constant 0 : index
    %c0_1 = arith.constant 0 : index
    %3 = vector.load %arg2[%c0, %c0_1] : memref<128x32xbf16, #tpu.memory_space<vmem>>, vector<128x32xbf16>
    %c0_2 = arith.constant 0 : index
    %c0_3 = arith.constant 0 : index
    %4 = vector.load %arg3[%c0_2, %c0_3] : memref<32x128xbf16, #tpu.memory_space<vmem>>, vector<32x128xbf16>
    %cst = arith.constant dense<0.000000e+00> : vector<128x128xf32>
    %5 = tpu.matmul %3, %4, %cst {dimension_numbers = #tpu.dot_dimension_numbers<[1], [0], [0], [1], [0, 0, 1, 1], [], []>} : vector<128x32xbf16>, vector<32x128xbf16>, vector<128x128xf32> -> vector<128x128xf32>
    %c0_4 = arith.constant 0 : index
    %c0_5 = arith.constant 0 : index
    %6 = vector.load %arg4[%c0_4, %c0_5] : memref<1x128xf32, #tpu.memory_space<vmem>>, vector<1x128xf32>
    %7 = vector.broadcast %6 : vector<1x128xf32> to vector<128x128xf32>
    %8 = arith.addf %5, %7 : vector<128x128xf32>
    %9 = tpu.iota {dimensions = array<i32: 1>} : vector<1x128xi32>
    %c128_i32 = arith.constant 128 : i32
    %10 = arith.muli %arg1, %c128_i32 : i32
    %c300_i32 = arith.constant 300 : i32
    %11 = arith.subi %c300_i32, %10 : i32
    %12 = vector.broadcast %11 : i32 to vector<1x128xi32>
    %13 = arith.cmpi slt, %9, %12 : vector<1x128xi32>
    %cst_6 = arith.constant -1.000000e+30 : f32
    %14 = vector.shape_cast %13 : vector<1x128xi1> to vector<1x128xi1>
    %15 = vector.broadcast %14 : vector<1x128xi1> to vector<128x128xi1>
    %16 = vector.broadcast %cst_6 : f32 to vector<128x128xf32>
    %17 = arith.select %15, %8, %16 : vector<128x128xi1>, vector<128x128xf32>
    %c0_7 = arith.constant 0 : index
    %c0_8 = arith.constant 0 : index
    %18 = vector.load %arg5[%c0_7, %c0_8] : memref<128x1xi32, #tpu.memory_space<vmem>>, vector<128x1xi32>
    %c128_i32_9 = arith.constant 128 : i32
    %19 = arith.muli %arg1, %c128_i32_9 : i32
    %20 = vector.broadcast %19 : i32 to vector<128x1xi32>
    %21 = arith.subi %18, %20 : vector<128x1xi32>
    %cst_10 = arith.constant dense<0xFF800000> : vector<128xf32>
    %22 = vector.multi_reduction <maximumf>, %17, %cst_10 [1] : vector<128x128xf32> to vector<128xf32>
    %23 = vector.shape_cast %22 : vector<128xf32> to vector<128x1xf32>
    %c0_11 = arith.constant 0 : index
    %c0_12 = arith.constant 0 : index
    %24 = vector.load %arg8[%c0_11, %c0_12] : memref<128x1xf32, #tpu.memory_space<vmem>>, vector<128x1xf32>
    %25 = arith.maximumf %24, %23 : vector<128x1xf32>
    %26 = vector.broadcast %25 : vector<128x1xf32> to vector<128x128xf32>
    %27 = arith.subf %17, %26 : vector<128x128xf32>
    %28 = math.exp %27 : vector<128x128xf32>
    %c0_13 = arith.constant 0 : index
    %c0_14 = arith.constant 0 : index
    %29 = vector.load %arg9[%c0_13, %c0_14] : memref<128x1xf32, #tpu.memory_space<vmem>>, vector<128x1xf32>
    %30 = arith.subf %24, %25 : vector<128x1xf32>
    %31 = math.exp %30 : vector<128x1xf32>
    %32 = arith.mulf %29, %31 : vector<128x1xf32>
    %cst_15 = arith.constant dense<0.000000e+00> : vector<128xf32>
    %33 = vector.multi_reduction <add>, %28, %cst_15 [1] : vector<128x128xf32> to vector<128xf32>
    %34 = vector.shape_cast %33 : vector<128xf32> to vector<128x1xf32>
    %35 = arith.addf %32, %34 : vector<128x1xf32>
    %c0_16 = arith.constant 0 : index
    %c0_17 = arith.constant 0 : index
    %36 = vector.load %arg9[%c0_16, %c0_17] : memref<128x1xf32, #tpu.memory_space<vmem>>, vector<128x1xf32>
    tpu.vector_store %arg9[%c0_16, %c0_17], %35 {strides = array<i32>} : memref<128x1xf32, #tpu.memory_space<vmem>>, vector<128x1xf32>,
    %c0_18 = arith.constant 0 : index
    %c0_19 = arith.constant 0 : index
    %37 = vector.load %arg10[%c0_18, %c0_19] : memref<128x1xf32, #tpu.memory_space<vmem>>, vector<128x1xf32>
    %38 = vector.broadcast %9 : vector<1x128xi32> to vector<128x128xi32>
    %39 = vector.broadcast %21 : vector<128x1xi32> to vector<128x128xi32>
    %40 = arith.cmpi eq, %38, %39 : vector<128x128xi32>
    %cst_20 = arith.constant 0.000000e+00 : f32
    %41 = vector.broadcast %cst_20 : f32 to vector<128x128xf32>
    %42 = arith.select %40, %17, %41 : vector<128x128xi1>, vector<128x128xf32>
    %cst_21 = arith.constant dense<0.000000e+00> : vector<128xf32>
    %43 = vector.multi_reduction <add>, %42, %cst_21 [1] : vector<128x128xf32> to vector<128xf32>
    %44 = vector.shape_cast %43 : vector<128xf32> to vector<128x1xf32>
    %45 = arith.addf %37, %44 : vector<128x1xf32>
    %c0_22 = arith.constant 0 : index
    %c0_23 = arith.constant 0 : index
    %46 = vector.load %arg10[%c0_22, %c0_23] : memref<128x1xf32, #tpu.memory_space<vmem>>, vector<128x1xf32>
    tpu.vector_store %arg10[%c0_22, %c0_23], %45 {strides = array<i32>} : memref<128x1xf32, #tpu.memory_space<vmem>>, vector<128x1xf32>,
    %47 = vector.broadcast %23 : vector<128x1xf32> to vector<128x128xf32>
    %48 = arith.cmpf oeq, %17, %47 : vector<128x128xf32>
    %c2147483647_i32 = arith.constant 2147483647 : i32
    %49 = vector.shape_cast %9 : vector<1x128xi32> to vector<1x128xi32>
    %50 = vector.broadcast %49 : vector<1x128xi32> to vector<128x128xi32>
    %51 = vector.broadcast %c2147483647_i32 : i32 to vector<128x128xi32>
    %52 = arith.select %48, %50, %51 : vector<128x128xi1>, vector<128x128xi32>
    %cst_24 = arith.constant dense<2147483647> : vector<128xi32>
    %53 = vector.multi_reduction <minsi>, %52, %cst_24 [1] : vector<128x128xi32> to vector<128xi32>
    %54 = vector.shape_cast %53 : vector<128xi32> to vector<128x1xi32>
    %55 = arith.cmpf ogt, %23, %24 : vector<128x1xf32>
    %c128_i32_25 = arith.constant 128 : i32
    %56 = arith.muli %arg1, %c128_i32_25 : i32
    %57 = vector.broadcast %56 : i32 to vector<128x1xi32>
    %58 = arith.addi %54, %57 : vector<128x1xi32>
    %c0_26 = arith.constant 0 : index
    %c0_27 = arith.constant 0 : index
    %59 = vector.load %arg11[%c0_26, %c0_27] : memref<128x1xi32, #tpu.memory_space<vmem>>, vector<128x1xi32>
    %60 = arith.select %55, %58, %59 : vector<128x1xi1>, vector<128x1xi32>
    %c0_28 = arith.constant 0 : index
    %c0_29 = arith.constant 0 : index
    %61 = vector.load %arg11[%c0_28, %c0_29] : memref<128x1xi32, #tpu.memory_space<vmem>>, vector<128x1xi32>
    tpu.vector_store %arg11[%c0_28, %c0_29], %60 {strides = array<i32>} : memref<128x1xi32, #tpu.memory_space<vmem>>, vector<128x1xi32>,
    %c0_30 = arith.constant 0 : index
    %c0_31 = arith.constant 0 : index
    %62 = vector.load %arg8[%c0_30, %c0_31] : memref<128x1xf32, #tpu.memory_space<vmem>>, vector<128x1xf32>
    tpu.vector_store %arg8[%c0_30, %c0_31], %25 {strides = array<i32>} : memref<128x1xf32, #tpu.memory_space<vmem>>, vector<128x1xf32>,
    %c2_i32 = arith.constant 2 : i32
    %63 = arith.cmpi eq, %arg1, %c2_i32 : i32
    %64 = arith.extui %63 : i1 to i32
    %c0_i32_32 = arith.constant 0 : i32
    %65 = arith.cmpi ne, %64, %c0_i32_32 : i32
    scf.if %65 {
      %c128_i32_33 = arith.constant 128 : i32
      %66 = arith.muli %arg0, %c128_i32_33 : i32
      %67 = tpu.iota {dimensions = array<i32: 0>} : vector<128x1xi32>
      %68 = vector.broadcast %66 : i32 to vector<128x1xi32>
      %69 = arith.addi %68, %67 : vector<128x1xi32>
      %c200_i32 = arith.constant 200 : i32
      %70 = vector.broadcast %c200_i32 : i32 to vector<128x1xi32>
      %71 = arith.cmpi slt, %69, %70 : vector<128x1xi32>
      %c0_i32_34 = arith.constant 0 : i32
      %72 = vector.broadcast %c0_i32_34 : i32 to vector<128x1xi32>
      %73 = arith.cmpi ne, %18, %72 : vector<128x1xi32>
      %74 = arith.andi %71, %73 : vector<128x1xi1>
      %c0_35 = arith.constant 0 : index
      %c0_36 = arith.constant 0 : index
      %75 = vector.load %arg8[%c0_35, %c0_36] : memref<128x1xf32, #tpu.memory_space<vmem>>, vector<128x1xf32>
      %c0_37 = arith.constant 0 : index
      %c0_38 = arith.constant 0 : index
      %76 = vector.load %arg9[%c0_37, %c0_38] : memref<128x1xf32, #tpu.memory_space<vmem>>, vector<128x1xf32>
      %77 = math.log %76 : vector<128x1xf32>
      %78 = arith.addf %75, %77 : vector<128x1xf32>
      %c0_39 = arith.constant 0 : index
      %c0_40 = arith.constant 0 : index
      %79 = vector.load %arg10[%c0_39, %c0_40] : memref<128x1xf32, #tpu.memory_space<vmem>>, vector<128x1xf32>
      %80 = arith.subf %78, %79 : vector<128x1xf32>
      %cst_41 = arith.constant 0.000000e+00 : f32
      %81 = vector.broadcast %cst_41 : f32 to vector<128x1xf32>
      %82 = arith.select %74, %80, %81 : vector<128x1xi1>, vector<128x1xf32>
      %c0_42 = arith.constant 0 : index
      %c0_43 = arith.constant 0 : index
      %83 = vector.load %arg11[%c0_42, %c0_43] : memref<128x1xi32, #tpu.memory_space<vmem>>, vector<128x1xi32>
      %84 = arith.cmpi eq, %83, %18 : vector<128x1xi32>
      %85 = arith.andi %84, %74 : vector<128x1xi1>
      %86 = vector.shape_cast %82 : vector<128x1xf32> to vector<1x128x1xf32>
      %cst_44 = arith.constant dense<0.000000e+00> : vector<1xf32>
      %87 = vector.multi_reduction <add>, %86, %cst_44 [1, 2] : vector<1x128x1xf32> to vector<1xf32>
      %88 = vector.shape_cast %87 : vector<1xf32> to vector<1x1x1xf32>
      %89 = vector.extract %88[0, 0, 0] : f32 from vector<1x1x1xf32>
      %90 = vector.broadcast %89 : f32 to vector<8x128xf32>
      %c0_45 = arith.constant 0 : index
      %c0_46 = arith.constant 0 : index
      %91 = vector.load %arg6[%c0_45, %c0_46] : memref<8x128xf32, #tpu.memory_space<vmem>>, vector<8x128xf32>
      tpu.vector_store %arg6[%c0_45, %c0_46], %90 {strides = array<i32>} : memref<8x128xf32, #tpu.memory_space<vmem>>, vector<8x128xf32>,
      %92 = arith.extui %85 : vector<128x1xi1> to vector<128x1xi32>
      %93 = vector.shape_cast %92 : vector<128x1xi32> to vector<1x128x1xi32>
      %cst_47 = arith.constant dense<0> : vector<1xi32>
      %94 = vector.multi_reduction <add>, %93, %cst_47 [1, 2] : vector<1x128x1xi32> to vector<1xi32>
      %95 = vector.shape_cast %94 : vector<1xi32> to vector<1x1x1xi32>
      %96 = vector.extract %95[0, 0, 0] : i32 from vector<1x1x1xi32>
      %97 = vector.broadcast %96 : i32 to vector<8x128xi32>
      %c0_48 = arith.constant 0 : index
      %c0_49 = arith.constant 0 : index
      %98 = vector.load %arg7[%c0_48, %c0_49] : memref<8x128xi32, #tpu.memory_space<vmem>>, vector<8x128xi32>
      tpu.vector_store %arg7[%c0_48, %c0_49], %97 {strides = array<i32>} : memref<8x128xi32, #tpu.memory_space<vmem>>, vector<8x128xi32>,
    } else {
    }
    return
  }
  func.func @transform_0(%arg0: i32, %arg1: i32) -> (i32, i32) {
    %c0_i32 = arith.constant 0 : i32
    %c0_i32_0 = arith.constant 0 : i32
    return %arg0, %c0_i32 : i32, i32
  }
  func.func @transform_1(%arg0: i32, %arg1: i32) -> (i32, i32) {
    %c0_i32 = arith.constant 0 : i32
    %c0_i32_0 = arith.constant 0 : i32
    return %c0_i32, %arg1 : i32, i32
  }
  func.func @transform_2(%arg0: i32, %arg1: i32) -> (i32, i32) {
    %c0_i32 = arith.constant 0 : i32
    %c0_i32_0 = arith.constant 0 : i32
    return %c0_i32, %arg1 : i32, i32
  }
  func.func @transform_3(%arg0: i32, %arg1: i32) -> (i32, i32) {
    %c0_i32 = arith.constant 0 : i32
    %c0_i32_0 = arith.constant 0 : i32
    return %arg0, %c0_i32 : i32, i32
  }
  func.func @transform_4(%arg0: i32, %arg1: i32) -> (i32, i32) {
    %c0_i32 = arith.constant 0 : i32
    %c0_i32_0 = arith.constant 0 : i32
    return %arg0, %c0_i32 : i32, i32
  }
  func.func @transform_5(%arg0: i32, %arg1: i32) -> (i32, i32) {
    %c0_i32 = arith.constant 0 : i32
    %c0_i32_0 = arith.constant 0 : i32
    return %arg0, %c0_i32 : i32, i32
  }
}

</mosaic_0001>

<bundles_post_ra>
// kernel: tpu_custom_call.1
= control target key start
LH: loop header
LB: loop body
LE: loop exit
PB: predicated region body
PF: predicated region fallthrough
CT: control target
= control target key end

     0   :  { %s4252_s0 = inlined_call_operand.vmem [shape: bf16[200,32], index: 0, kind: input, shape index: {}]   ;;  %s4253_s1 = inlined_call_operand.vmem [shape: bf16[32,300], index: 1, kind: input, shape index: {}]   ;;  %s4254_s2 = inlined_call_operand.vmem [shape: f32[1,300], index: 2, kind: input, shape index: {}]   ;;  %s4255_s3 = inlined_call_operand.vmem [shape: s32[200,1], index: 3, kind: input, shape index: {}]   ;;  %s4256_s4 = inlined_call_operand.hbm [shape: f32[16,128], index: 4, kind: output, shape index: {0}]   ;;  %s4257_s5 = inlined_call_operand.hbm [shape: s32[16,128], index: 5, kind: output, shape index: {1}]  }
   0x1   :  { %4378 = sst [smem:[#allocation88_spill]] %s4253_s1 }
   0x2   :  { %11 = vsyncpa [#allocation8], 0 }
   0x3   :  { %13 = vsyncpa [#allocation8 + $0x1], 0 }
   0x4   :  { %14 = vsyncpa [#allocation10], 0 }
   0x5   :  { %16 = vsyncpa [#allocation10 + $0x1], 0  ;;  %s2587_s18 = smov 0   ;;  %s2589_s19 = smov 0  }
   0x6   :  { %s2591_s20 = smov 0   ;;  %s2593_s21 = smov 0  }
   0x7   :  { %s2595_s22 = smov 0   ;;  %s2597_s23 = smov 0  }
   0x8   :  { %s2599_s24 = smov 0   ;;  %s2601_s25 = smov 0  }
   0x9   :  { %s2603_s26 = smov 0   ;;  %s2605_s27 = smov 0  }
   0xa LB: > { %4379 = sst [smem:[#allocation13_spill]] %s2520_s20  ;;  %s2120_s28 = sadd.s32 4294967295, %s2548_s27   ;;  %s2548_s27 = sphi %s2605_s27, %s22_s27   ;;  %s2544_s26 = sphi %s2603_s26, %s4693_s26   ;;  %s2540_s25 = sphi %s2601_s25, %s4692_s25   ;;  %s2536_s24 = sphi %s2599_s24, %s4691_s24   ;;  %s2532_s23 = sphi %s2597_s23, %s4690_s23   ;;  %s2528_s22 = sphi %s2595_s22, %s4689_s22   ;;  %s2524_s21 = sphi %s2593_s21, %s4688_s21   ;;  %s2520_s20 = sphi %s2591_s20, %s4687_s20   ;;  %s2516_s19 = sphi %s2589_s19, %s4695_s19   ;;  %s2512_s18 = sphi %s2587_s18, %s4694_s18  }
   0xb   : > { %4380 = sst [smem:[#allocation14_spill]] %s2528_s22  ;;  %s2121_s29 = sadd.s32 4294967294, %s2548_s27  }
   0xc   : > { %4381 = sst [smem:[#allocation15_spill]] %s2540_s25  ;;  %s31_s30 = sadd.s32 1, %s2540_s25 }
   0xd   : > { %4382 = sst [smem:[#allocation16_spill]] %s2544_s26  ;;  %s34_s6 = sadd.s32 1, %s2544_s26 }
   0xe   : > { %p32_p0 = scmp.ge.s32.totalorder %s31_s30, 3  ;;  %s67_s7 = sadd.s32 1, %s2528_s22 }
   0xf   : > { %p74_p1 = scmp.ne.s32.totalorder %s2528_s22, %s2524_s21  ;;  %p75_p2 = scmp.eq.s32.totalorder %s2548_s27, 0 }
  0x10   : > { %s4697_s30 = smov (%p32_p0, %s31_s30), 0  ;;  %s4699_s6 = smov (!%p32_p0, %s34_s6), %s2544_s26 }
  0x11   : > { %4383 = sst [smem:[#allocation17_spill]] %s4697_s30  ;;  %s64_s8 = ssub.s32 %s2540_s25, %s4697_s30 }
  0x12   : > { %p2650_p3 = por %p75_p2, %p74_p1  ;;  %p36_p4 = scmp.ge.s32.totalorder %s4699_s6, 2 }
  0x13   : > { %p65_p5 = scmp.eq.s32.totalorder %s64_s8, 0  ;;  %s145_s10 = sadd.s32 1, %s2520_s20 }
  0x14   : > { %p155_p6 = scmp.ne.s32.totalorder %s2520_s20, %s2516_s19  ;;  %s4701_s6 = smov (%p36_p4, %s4699_s6), 0 }
  0x15   : > { %4385 = sst [smem:[#allocation18_spill]] %s4701_s6  ;;  %s142_s12 = ssub.s32 %s2544_s26, %s4701_s6 }
  0x16   : > { %s2660_s11 = scalar_select %p65_p5, %s2528_s22, %s67_s7  }
  0x17   : > { %p156_p7 = scmp.eq.s32.totalorder %s2120_s28, 5  ;;  %p143_p8 = scmp.eq.s32.totalorder %s142_s12, 0 }
  0x18   : > { %4386 = sst [smem:[#allocation19_spill]] %s2660_s11  ;;  %p161_p9 = scmp.ne.s32.totalorder %s2516_s19, %s2512_s18 }
  0x19   : > { %p2666_p10 = por %p156_p7, %p155_p6  ;;  %p162_p11 = scmp.eq.s32.totalorder %s2121_s29, 5 }
  0x1a   : > { %s2671_s14 = scalar_select %p143_p8, %s2520_s20, %s145_s10  }
  0x1b   : > { %p2673_p12 = por %p162_p11, %p161_p9  ;;  %p2123_p13 = scmp.ge.s32.totalorder %s2548_s27, 6 }
  0x1c   : > { %4388 = sst [smem:[#allocation20_spill]] %s2671_s14 }
  0x1d   : > { %204 = sbr.rel (%p2123_p13) target bundleno = 48 (0x30), region = 16 }
  0x24   : > { %224 = sbr.rel (!%p2650_p3) target bundleno = 48 (0x30), region = 24  ;;  %s226_s16 = sand.u32 (%p2650_p3), 1, %s2528_s22  }
  0x25   : > { %s2125_s17 = sshll.u32 (%p2650_p3), %s2540_s25, 2  ;;  %s2124_s28 = sshll.u32 (%p2650_p3), %s226_s16, 4 }
  0x26   : > { %s4390_s1 = sld [smem:[#allocation88_spill]] (%p2650_p3)  ;;  %s228_s10 = scalar_lea.vmem (%p2650_p3), [#allocation6], %s2124_s28 }
  0x2c   : > { %s230_s29 = scalar_lea.vmem %s4390_s1, %s2125_s17 }
  0x2d   : > { %v246_v0 = vld [vmem:[%s230_s29] sm:$0xf]  ;;  %v248_v1 = vld [vmem:[%s230_s29 + $0xc] sm:$0xf]  ;;  %v250_v2 = vld [vmem:[%s230_s29 + $0x18] sm:$0xf] }
  0x2e   : > { %247 = vst [vmem:[%s228_s10] sm:$0xf] %v246_v0  ;;  %249 = vst [vmem:[%s228_s10 + $0x4] sm:$0xf] %v248_v1  ;;  %v252_v3 = vld [vmem:[%s230_s29 + $0x24] sm:$0xf] }
  0x2f   : > { %251 = vst [vmem:[%s228_s10 + $0x8] sm:$0xf] %v250_v2  ;;  %253 = vst [vmem:[%s228_s10 + $0xc] sm:$0xf] %v252_v3 }
  0x30 PF: > { %p2126_p0 = scmp.ge.s32.totalorder %s2548_s27, 1  ;;  %p306_p1 = scmp.lt.s32.totalorder %s2548_s27, 7 }
  0x32   : > { %p307_p2 = pnand %p2126_p0, %p306_p1 }
  0x34   : > { %310 = sbr.rel (%p307_p2) target bundleno = 1267 (0x4f3), region = 73 }
  0x3b   : > { %s313_s9 = sand.u32 1, %s2524_s21   ;;  %s2689_s12 = sand.u32 1, %s2516_s19  }
  0x3c   : > { %s2691_s16 = sshll.u32 %s313_s9, 4  ;;  %s2128_s17 = sshll.u32 %s2689_s12, 3 }
  0x3d   : > { %s2130_s28 = sshll.u32 %s2536_s24, 4  ;;  %p380_p4 = scmp.lt.s32.totalorder %s2532_s23, 2 }
  0x3e   : > { %p371_p3 = scmp.lt.s32.totalorder %s2130_s28, 24  ;;  %s315_s22 = scalar_lea.vmem [#allocation6], %s2691_s16 }
  0x3f   : > { %s2697_s7 = scalar_select %p380_p4, %s2532_s23, 2 }
  0x40   : > { %s4703_s28 = smov (!%p371_p3, %s2130_s28), 24  ;;  %s2714_s14 = scalar_lea.vmem [#allocation7], %s2128_s17 }
  0x41   : > { %s2131_s8 = sshll.u32 %s4703_s28, 2  ;;  %s2133_s29 = sshll.u32 %s4703_s28, 3 }
  0x42   : > { %s2702_s21 = scalar_lea.vmem %s4252_s0, %s2131_s8  ;;  %s382_s9 = scalar_lea.vmem %s4254_s2, %s2697_s7 }
  0x43   : > { %s2711_s11 = scalar_lea.vmem %s4255_s3, %s2133_s29  ;;  %s2716_s20 = scalar_lea.vmem [#allocation9], %s2128_s17 }
  0x44   : > { %p2134_p5 = scmp.ne.s32.totalorder %s2532_s23, 0 }
  0x45   : > { %vm402_vm0 = vcmask (!%p2134_p5), 7168   ;;  %v2550_v4 = vmov (!%p2134_p5), -inf   ;;  %v2551_v5 = vmov (!%p2134_p5), 0.0   ;;  %v2552_v6 = vmov (!%p2134_p5), 0  }
  0x46   : > { %401 = sbr.rel (%p2134_p5) target bundleno = 102 (0x66), region = 81  ;;  %403 = vst.msk [vmem:[#allocation2] sm:$0xff] (!%p2134_p5), %vm402_vm0, %v2550_v4  ;;  %404 = vst.msk [vmem:[#allocation2 + $0x8] sm:$0xff] (!%p2134_p5), %vm402_vm0, %v2550_v4 }
  0x47   : > { %405 = vst.msk [vmem:[#allocation2 + $0x10] sm:$0xff] (!%p2134_p5), %vm402_vm0, %v2550_v4  ;;  %406 = vst.msk [vmem:[#allocation2 + $0x18] sm:$0xff] (!%p2134_p5), %vm402_vm0, %v2550_v4 }
  0x48   : > { %407 = vst.msk [vmem:[#allocation2 + $0x20] sm:$0xff] (!%p2134_p5), %vm402_vm0, %v2550_v4  ;;  %408 = vst.msk [vmem:[#allocation2 + $0x28] sm:$0xff] (!%p2134_p5), %vm402_vm0, %v2550_v4 }
  0x49   : > { %409 = vst.msk [vmem:[#allocation2 + $0x30] sm:$0xff] (!%p2134_p5), %vm402_vm0, %v2550_v4  ;;  %410 = vst.msk [vmem:[#allocation2 + $0x38] sm:$0xff] (!%p2134_p5), %vm402_vm0, %v2550_v4 }
  0x4a   : > { %411 = vst.msk [vmem:[#allocation2 + $0x40] sm:$0xff] (!%p2134_p5), %vm402_vm0, %v2550_v4  ;;  %412 = vst.msk [vmem:[#allocation2 + $0x48] sm:$0xff] (!%p2134_p5), %vm402_vm0, %v2550_v4 }
  0x4b   : > { %413 = vst.msk [vmem:[#allocation2 + $0x50] sm:$0xff] (!%p2134_p5), %vm402_vm0, %v2550_v4  ;;  %414 = vst.msk [vmem:[#allocation2 + $0x58] sm:$0xff] (!%p2134_p5), %vm402_vm0, %v2550_v4 }
  0x4c   : > { %415 = vst.msk [vmem:[#allocation2 + $0x60] sm:$0xff] (!%p2134_p5), %vm402_vm0, %v2550_v4  ;;  %416 = vst.msk [vmem:[#allocation2 + $0x68] sm:$0xff] (!%p2134_p5), %vm402_vm0, %v2550_v4 }
  0x4d   : > { %417 = vst.msk [vmem:[#allocation2 + $0x70] sm:$0xff] %vm402_vm0, %v2550_v4  ;;  %418 = vst.msk [vmem:[#allocation2 + $0x78] sm:$0xff] %vm402_vm0, %v2550_v4 }
  0x4e   : > { %419 = vst.msk [vmem:[#allocation3] sm:$0xff] %vm402_vm0, %v2551_v5  ;;  %420 = vst.msk [vmem:[#allocation3 + $0x8] sm:$0xff] %vm402_vm0, %v2551_v5 }
  0x4f   : > { %421 = vst.msk [vmem:[#allocation3 + $0x10] sm:$0xff] %vm402_vm0, %v2551_v5  ;;  %422 = vst.msk [vmem:[#allocation3 + $0x18] sm:$0xff] %vm402_vm0, %v2551_v5 }
  0x50   : > { %423 = vst.msk [vmem:[#allocation3 + $0x20] sm:$0xff] %vm402_vm0, %v2551_v5  ;;  %424 = vst.msk [vmem:[#allocation3 + $0x28] sm:$0xff] %vm402_vm0, %v2551_v5 }
  0x51   : > { %425 = vst.msk [vmem:[#allocation3 + $0x30] sm:$0xff] %vm402_vm0, %v2551_v5  ;;  %426 = vst.msk [vmem:[#allocation3 + $0x38] sm:$0xff] %vm402_vm0, %v2551_v5 }
  0x52   : > { %427 = vst.msk [vmem:[#allocation3 + $0x40] sm:$0xff] %vm402_vm0, %v2551_v5  ;;  %428 = vst.msk [vmem:[#allocation3 + $0x48] sm:$0xff] %vm402_vm0, %v2551_v5 }
  0x53   : > { %429 = vst.msk [vmem:[#allocation3 + $0x50] sm:$0xff] %vm402_vm0, %v2551_v5  ;;  %430 = vst.msk [vmem:[#allocation3 + $0x58] sm:$0xff] %vm402_vm0, %v2551_v5 }
  0x54   : > { %431 = vst.msk [vmem:[#allocation3 + $0x60] sm:$0xff] %vm402_vm0, %v2551_v5  ;;  %432 = vst.msk [vmem:[#allocation3 + $0x68] sm:$0xff] %vm402_vm0, %v2551_v5 }
  0x55   : > { %433 = vst.msk [vmem:[#allocation3 + $0x70] sm:$0xff] %vm402_vm0, %v2551_v5  ;;  %434 = vst.msk [vmem:[#allocation3 + $0x78] sm:$0xff] %vm402_vm0, %v2551_v5 }
  0x56   : > { %435 = vst.msk [vmem:[#allocation4] sm:$0xff] %vm402_vm0, %v2551_v5  ;;  %436 = vst.msk [vmem:[#allocation4 + $0x8] sm:$0xff] %vm402_vm0, %v2551_v5 }
  0x57   : > { %437 = vst.msk [vmem:[#allocation4 + $0x10] sm:$0xff] %vm402_vm0, %v2551_v5  ;;  %438 = vst.msk [vmem:[#allocation4 + $0x18] sm:$0xff] %vm402_vm0, %v2551_v5 }
  0x58   : > { %439 = vst.msk [vmem:[#allocation4 + $0x20] sm:$0xff] %vm402_vm0, %v2551_v5  ;;  %440 = vst.msk [vmem:[#allocation4 + $0x28] sm:$0xff] %vm402_vm0, %v2551_v5 }
  0x59   : > { %441 = vst.msk [vmem:[#allocation4 + $0x30] sm:$0xff] %vm402_vm0, %v2551_v5  ;;  %442 = vst.msk [vmem:[#allocation4 + $0x38] sm:$0xff] %vm402_vm0, %v2551_v5 }
  0x5a   : > { %443 = vst.msk [vmem:[#allocation4 + $0x40] sm:$0xff] %vm402_vm0, %v2551_v5  ;;  %444 = vst.msk [vmem:[#allocation4 + $0x48] sm:$0xff] %vm402_vm0, %v2551_v5 }
  0x5b   : > { %445 = vst.msk [vmem:[#allocation4 + $0x50] sm:$0xff] %vm402_vm0, %v2551_v5  ;;  %446 = vst.msk [vmem:[#allocation4 + $0x58] sm:$0xff] %vm402_vm0, %v2551_v5 }
  0x5c   : > { %447 = vst.msk [vmem:[#allocation4 + $0x60] sm:$0xff] %vm402_vm0, %v2551_v5  ;;  %448 = vst.msk [vmem:[#allocation4 + $0x68] sm:$0xff] %vm402_vm0, %v2551_v5 }
  0x5d   : > { %449 = vst.msk [vmem:[#allocation4 + $0x70] sm:$0xff] %vm402_vm0, %v2551_v5  ;;  %450 = vst.msk [vmem:[#allocation4 + $0x78] sm:$0xff] %vm402_vm0, %v2551_v5 }
  0x5e   : > { %451 = vst.msk [vmem:[#allocation5] sm:$0xff] %vm402_vm0, %v2552_v6  ;;  %452 = vst.msk [vmem:[#allocation5 + $0x8] sm:$0xff] %vm402_vm0, %v2552_v6 }
  0x5f   : > { %453 = vst.msk [vmem:[#allocation5 + $0x10] sm:$0xff] %vm402_vm0, %v2552_v6  ;;  %454 = vst.msk [vmem:[#allocation5 + $0x18] sm:$0xff] %vm402_vm0, %v2552_v6 }
  0x60   : > { %455 = vst.msk [vmem:[#allocation5 + $0x20] sm:$0xff] %vm402_vm0, %v2552_v6  ;;  %456 = vst.msk [vmem:[#allocation5 + $0x28] sm:$0xff] %vm402_vm0, %v2552_v6 }
  0x61   : > { %457 = vst.msk [vmem:[#allocation5 + $0x30] sm:$0xff] %vm402_vm0, %v2552_v6  ;;  %458 = vst.msk [vmem:[#allocation5 + $0x38] sm:$0xff] %vm402_vm0, %v2552_v6 }
  0x62   : > { %459 = vst.msk [vmem:[#allocation5 + $0x40] sm:$0xff] %vm402_vm0, %v2552_v6  ;;  %460 = vst.msk [vmem:[#allocation5 + $0x48] sm:$0xff] %vm402_vm0, %v2552_v6 }
  0x63   : > { %461 = vst.msk [vmem:[#allocation5 + $0x50] sm:$0xff] %vm402_vm0, %v2552_v6  ;;  %462 = vst.msk [vmem:[#allocation5 + $0x58] sm:$0xff] %vm402_vm0, %v2552_v6 }
  0x64   : > { %463 = vst.msk [vmem:[#allocation5 + $0x60] sm:$0xff] %vm402_vm0, %v2552_v6  ;;  %464 = vst.msk [vmem:[#allocation5 + $0x68] sm:$0xff] %vm402_vm0, %v2552_v6 }
  0x65   : > { %465 = vst.msk [vmem:[#allocation5 + $0x70] sm:$0xff] %vm402_vm0, %v2552_v6  ;;  %466 = vst.msk [vmem:[#allocation5 + $0x78] sm:$0xff] %vm402_vm0, %v2552_v6 }
  0x66 PF: > { %v2300_v7 = vld [vmem:[%s315_s22] sm:$0xff]   ;;  %v2301_v8 = vld [vmem:[%s315_s22 + $0x8] sm:$0xff]   ;;  %vm546_vm1 = vcmask 261120   ;;  %s2154_s1 = sshll.u32 %s2532_s23, 7  ;;  %v2553_v14 = vmov 0   ;;  %v4264_v51 = vlaneseq  ;;  %vm4360_vm11 = vcmask 7168  }
  0x67   : > { %2173 = vmatprep.subr.bf16.mxu0 %v2300_v7  ;;  %2193 = vmatprep.subr.bf16.mxu1 %v2300_v7  ;;  %v2302_v9 = vld [vmem:[%s2702_s21] sm:$0xff]   ;;  %v2304_v11 = vld [vmem:[%s2702_s21 + $0x8] sm:$0xff]   ;;  %v2306_v13 = vld [vmem:[%s2702_s21 + $0x10] sm:$0xff]   ;;  %v2798_v16 = vstv %s2154_s1  ;;  %s671_s22 = ssub.s32 300, %s2154_s1  ;;  %p2155_p6 = scmp.ne.s32.totalorder %s2532_s23, 2 }
  0x68   : > { %2174 = vmatpush3.bf16.msra.mxu0 %v2300_v7  ;;  %2195 = vmatpush3.bf16.msra.mxu1 %v2300_v7  ;;  %v2303_v10 = vld [vmem:[%s2702_s21 + $0x20] sm:$0xff]   ;;  %v2305_v12 = vld [vmem:[%s2702_s21 + $0x28] sm:$0xff]   ;;  %v2307_v15 = vld [vmem:[%s2702_s21 + $0x30] sm:$0xff]   ;;  %4391 = vst [vmem:[#allocation21_spill] sm:$0xff] %v2798_v16  ;;  %v2891_v52 = vand.u32 127, %v4264_v51  ;;  %v672_v53 = vstv %s671_s22 }
  0x69   : > { %2175 = vmatprep.subr.bf16.mxu0 %v2301_v8  ;;  %2194 = vmatprep.subr.bf16.mxu1 %v2301_v8  ;;  %v2803_v17 = vld [vmem:[%s2711_s11 + $0x8] sm:$0xff]  ;;  %v2806_v18 = vld [vmem:[%s2711_s11] sm:$0xff]  ;;  %v2809_v19 = vld [vmem:[%s2711_s11 + $0x10] sm:$0xff] }
  0x6a   : > { %2177 = vmatprep.mubr.msk.bf16.mxu0 %vm546_vm1, %v2302_v9  ;;  %2185 = vmatprep.mubr.msk.bf16.mxu1 %vm546_vm1, %v2303_v10  ;;  %4392 = vst [vmem:[#allocation22_spill] sm:$0xff] %v2803_v17  ;;  %4393 = vst [vmem:[#allocation23_spill] sm:$0xff] %v2806_v18  ;;  %v710_v20 = vsub.s32 %v2803_v17, %v2798_v16  ;;  %v709_v21 = vsub.s32 %v2806_v18, %v2798_v16  ;;  %v2818_v22 = vld [vmem:[%s2711_s11 + $0x18] sm:$0xff]  ;;  %v2827_v27 = vld [vmem:[%s2711_s11 + $0x20] sm:$0xff] }
  0x6b   : > { %2299 = vset.pattern.permute.xlu1 %v2553_v14  ;;  %2298 = vset.pattern.permute.xlu0 %v2553_v14  ;;  %4394 = vst [vmem:[#allocation24_spill] sm:$0xff] %v2809_v19  ;;  %4395 = vst [vmem:[#allocation25_spill] sm:$0xff] %v2818_v22  ;;  %v2308_v23 = vld [vmem:[%s2702_s21 + $0x18] sm:$0xff]   ;;  %v711_v24 = vsub.s32 %v2809_v19, %v2798_v16  ;;  %v712_v25 = vsub.s32 %v2818_v22, %v2798_v16  ;;  %v2830_v28 = vld [vmem:[%s2711_s11 + $0x28] sm:$0xff] }
  0x6c   : > { %2176 = vmatpush3.bf16.msra.mxu0 %v2301_v8  ;;  %2196 = vmatpush3.bf16.msra.mxu1 %v2301_v8  ;;  %v2309_v26 = vld [vmem:[%s2702_s21 + $0x38] sm:$0xff]   ;;  %4396 = vst [vmem:[#allocation26_spill] sm:$0xff] %v2827_v27  ;;  %4397 = vst [vmem:[#allocation27_spill] sm:$0xff] %v2830_v28  ;;  %v713_v29 = vsub.s32 %v2827_v27, %v2798_v16  ;;  %v714_v30 = vsub.s32 %v2830_v28, %v2798_v16  ;;  %v2842_v32 = vld [vmem:[%s2711_s11 + $0x30] sm:$0xff] }
  0x6d   : > { %1082 = vperm.xlu1 %2299, %v710_v20   ;;  %1079 = vperm.xlu0 %2298, %v709_v21   ;;  %v2839_v31 = vld [vmem:[%s2711_s11 + $0x38] sm:$0xff]  ;;  %4399 = vst [vmem:[#allocation29_spill] sm:$0xff] %v2842_v32  ;;  %v715_v34 = vsub.s32 %v2842_v32, %v2798_v16  ;;  %v2849_v35 = vld [vmem:[%s2711_s11 + $0x40] sm:$0xff]  ;;  %v2852_v36 = vld [vmem:[%s2711_s11 + $0x48] sm:$0xff]  ;;  %vm2901_vm2 = vcmp.lt.s32.totalorder %v2891_v52, %v672_v53 }
  0x6e   : > { %4398 = vst [vmem:[#allocation28_spill] sm:$0xff] %v2839_v31  ;;  %v716_v33 = vsub.s32 %v2839_v31, %v2798_v16  ;;  %4400 = vst [vmem:[#allocation30_spill] sm:$0xff] %v2849_v35  ;;  %v717_v37 = vsub.s32 %v2849_v35, %v2798_v16  ;;  %v718_v38 = vsub.s32 %v2852_v36, %v2798_v16  ;;  %v2859_v39 = vld [vmem:[%s2711_s11 + $0x50] sm:$0xff]  ;;  %v2862_v40 = vld [vmem:[%s2711_s11 + $0x58] sm:$0xff] }
  0x6f   : > { %2178 = vmatmul.mubr.msk.bf16.vlgmr.msra.gmra.mrb[0].mxu0 %vm546_vm1, %v2304_v11  ;;  %2186 = vmatmul.mubr.msk.bf16.vlgmr.msra.gmra.mrb[0].mxu1 %vm546_vm1, %v2305_v12  ;;  %4401 = vst [vmem:[#allocation31_spill] sm:$0xff] %v2852_v36  ;;  %4402 = vst [vmem:[#allocation32_spill] sm:$0xff] %v2859_v39  ;;  %v719_v41 = vsub.s32 %v2859_v39, %v2798_v16  ;;  %v720_v42 = vsub.s32 %v2862_v40, %v2798_v16  ;;  %v2869_v43 = vld [vmem:[%s2711_s11 + $0x60] sm:$0xff]  ;;  %v2872_v44 = vld [vmem:[%s2711_s11 + $0x68] sm:$0xff] }
  0x70   : > { %2181 = vmatprep.mubr.msk.bf16.mxu0 %vm546_vm1, %v2306_v13  ;;  %2189 = vmatprep.mubr.msk.bf16.mxu1 %vm546_vm1, %v2307_v15  ;;  %4403 = vst [vmem:[#allocation33_spill] sm:$0xff] %v2862_v40  ;;  %4404 = vst [vmem:[#allocation34_spill] sm:$0xff] %v2869_v43  ;;  %v721_v45 = vsub.s32 %v2869_v43, %v2798_v16  ;;  %v722_v46 = vsub.s32 %v2872_v44, %v2798_v16  ;;  %v2879_v47 = vld [vmem:[%s2711_s11 + $0x70] sm:$0xff]  ;;  %v2882_v48 = vld [vmem:[%s2711_s11 + $0x78] sm:$0xff] }
  0x71   : > { %1085 = vperm.xlu1 %2299, %v711_v24   ;;  %1088 = vperm.xlu0 %2298, %v712_v25   ;;  %4405 = vst [vmem:[#allocation35_spill] sm:$0xff] %v2872_v44  ;;  %4406 = vst [vmem:[#allocation36_spill] sm:$0xff] %v2879_v47  ;;  %v723_v49 = vsub.s32 %v2879_v47, %v2798_v16  ;;  %v724_v50 = vsub.s32 %v2882_v48, %v2798_v16  ;;  %v2898_v54 = vld [vmem:[%s382_s9] ss:$0 sm:$0xff]  ;;  %v1062_v40 = vld [vmem:[#allocation4] sm:$0xff] }
  0x72   : > { %4407 = vst [vmem:[#allocation37_spill] sm:$0xff] %v2882_v48  ;;  %v1065_v43 = vld [vmem:[#allocation4 + $0x18] sm:$0xff]  ;;  %v1063_v32 = vld [vmem:[#allocation4 + $0x8] sm:$0xff] }
  0x75   : > { %1091 = vperm.xlu1 %2299, %v713_v29   ;;  %1094 = vperm.xlu0 %2298, %v714_v30  }
  0x77   : > { %2182 = vmatmul.mubr.msk.bf16.gmra.mrb[4].mxu0 %vm546_vm1, %v2308_v23  ;;  %2190 = vmatmul.mubr.msk.bf16.gmra.mrb[4].mxu1 %vm546_vm1, %v2309_v26 }
  0x79   : > { %1100 = vperm.xlu1 %2299, %v716_v33   ;;  %1097 = vperm.xlu0 %2298, %v715_v34  }
  0x7d   : > { %1103 = vperm.xlu1 %2299, %v717_v37   ;;  %1106 = vperm.xlu0 %2298, %v718_v38  }
  0x81   : > { %1109 = vperm.xlu1 %2299, %v719_v41   ;;  %1112 = vperm.xlu0 %2298, %v720_v42  }
  0x85   : > { %1115 = vperm.xlu1 %2299, %v721_v45   ;;  %1118 = vperm.xlu0 %2298, %v722_v46  }
  0x89   : > { %1121 = vperm.xlu1 %2299, %v723_v49   ;;  %1124 = vperm.xlu0 %2298, %v724_v50  }
  0xec   : > { %v1083_v55 = vpop.permute.xlu1 %1082  ;;  %v1080_v9 = vpop.permute.xlu0 %1079 }
  0xed   : > { %vm1126_vm5 = vcmp.eq.s32.totalorder %v2891_v52, %v1080_v9  ;;  %vm1127_vm6 = vcmp.eq.s32.totalorder %v2891_v52, %v1083_v55 }
  0xf0   : > { %v1086_v10 = vpop.permute.xlu1 %1085  ;;  %v1089_v33 = vpop.permute.xlu0 %1088 }
  0xf1   : > { %vm1128_vm3 = vcmp.eq.s32.totalorder %v2891_v52, %v1086_v10  ;;  %vm1129_vm4 = vcmp.eq.s32.totalorder %v2891_v52, %v1089_v33 }
 0x142   : > { %v2179_v56 = vpop.f32.mrb[0].mxu0  ;;  %v2187_v58 = vpop.f32.mrb[0].mxu1 }
 0x143   : > { %v614_v59 = vadd.f32 %v2179_v56, %v2898_v54  ;;  %v646_v60 = vadd.f32 %v2187_v58, %v2898_v54  ;;  %v605_v61 = vpop.f32.mrb[1].mxu0  ;;  %v637_v62 = vpop.f32.mrb[1].mxu1 }
 0x144   : > { %v606_v63 = vadd.f32 %v2898_v54, %v605_v61  ;;  %v2180_v0 = vpop.f32.mrb[2].mxu0  ;;  %v2188_v1 = vpop.f32.mrb[2].mxu1  ;;  %v638_v11 = vadd.f32 %v2898_v54, %v637_v62 }
 0x145   : > { %v2910_v2 = vsel %vm2901_vm2, %v614_v59, -1e+30  ;;  %v2914_v3 = vsel %vm2901_vm2, %v646_v60, -1e+30  ;;  %v617_v4 = vadd.f32 %v2180_v0, %v2898_v54  ;;  %v608_v5 = vpop.f32.mrb[3].mxu0  ;;  %v640_v6 = vpop.f32.mrb[3].mxu1  ;;  %v649_v12 = vadd.f32 %v2188_v1, %v2898_v54 }
 0x146   : > { %745 = vmax.xlane.f32.xlu0 %v2914_v3  ;;  %729 = vmax.xlane.f32.xlu1 %v2910_v2  ;;  %v2921_v7 = vsel %vm2901_vm2, %v606_v63, -1e+30  ;;  %v2933_v24 = vsel %vm2901_vm2, %v638_v11, -1e+30  ;;  %v641_v26 = vadd.f32 %v2898_v54, %v640_v6  ;;  %v1144_v37 = vsel %vm1128_vm3, %v2910_v2, 0.0  ;;  %v1095_v63 = vpop.permute.xlu0 %1094  ;;  %v1092_v0 = vpop.permute.xlu1 %1091 }
 0x147   : > { %v2925_v8 = vsel %vm2901_vm2, %v617_v4, -1e+30  ;;  %v2937_v25 = vsel %vm2901_vm2, %v649_v12, -1e+30  ;;  %v609_v38 = vadd.f32 %v2898_v54, %v608_v5  ;;  %v1142_v42 = vsel %vm1126_vm5, %v2921_v7, 0.0 }
 0x148   : > { %v2945_v34 = vsel %vm2901_vm2, %v641_v26, -1e+30  ;;  %v1145_v41 = vsel %vm1129_vm4, %v2925_v8, 0.0  ;;  %vm1131_vm9 = vcmp.eq.s32.totalorder %v2891_v52, %v1095_v63  ;;  %vm1130_vm10 = vcmp.eq.s32.totalorder %v2891_v52, %v1092_v0 }
 0x149   : > { %v2956_v45 = vsel %vm2901_vm2, %v609_v38, -1e+30  ;;  %v3035_v38 = vld [vmem:[#allocation2 + $0x10] sm:$0xff] }
 0x14a   : > { %v2191_v13 = vpop.f32.mrb[4].mxu1  ;;  %731 = vmax.xlane.f32.xlu1 %v2925_v8  ;;  %v2183_v14 = vpop.f32.mrb[4].mxu0  ;;  %725 = vmax.xlane.f32.xlu0 %v2921_v7  ;;  %v1143_v50 = vsel %vm1127_vm6, %v2956_v45, 0.0 }
 0x14b   : > { %v621_v15 = vpop.f32.mrb[5].mxu0  ;;  %v653_v20 = vpop.f32.mrb[5].mxu1  ;;  %v630_v46 = vadd.f32 %v2183_v14, %v2898_v54  ;;  %v662_v53 = vadd.f32 %v2191_v13, %v2898_v54 }
 0x14c   : > { %v2184_v21 = vpop.f32.mrb[6].mxu0  ;;  %v2192_v23 = vpop.f32.mrb[6].mxu1  ;;  %v622_v60 = vadd.f32 %v2898_v54, %v621_v15  ;;  %v654_v4 = vadd.f32 %v2898_v54, %v653_v20 }
 0x14d   : > { %v624_v29 = vpop.f32.mrb[7].mxu0  ;;  %v656_v30 = vpop.f32.mrb[7].mxu1  ;;  %v633_v49 = vadd.f32 %v2184_v21, %v2898_v54  ;;  %v2966_v56 = vsel %vm2901_vm2, %v630_v46, -1e+30  ;;  %v665_v55 = vadd.f32 %v2192_v23, %v2898_v54  ;;  %v2977_v59 = vsel %vm2901_vm2, %v662_v53, -1e+30 }
 0x14e   : > { %747 = vmax.xlane.f32.xlu1 %v2937_v25  ;;  %741 = vmax.xlane.f32.xlu0 %v2933_v24  ;;  %v625_v62 = vadd.f32 %v2898_v54, %v624_v29  ;;  %v2989_v1 = vsel %vm2901_vm2, %v622_v60, -1e+30  ;;  %v657_v6 = vadd.f32 %v2898_v54, %v656_v30  ;;  %v1098_v9 = vpop.permute.xlu0 %1097  ;;  %v3001_v10 = vsel %vm2901_vm2, %v654_v4, -1e+30  ;;  %v1101_v54 = vpop.permute.xlu1 %1100  ;;  %v3074_v4 = vld [vmem:[#allocation2 + $0x58] sm:$0xff]  ;;  %v1064_v53 = vld [vmem:[#allocation4 + $0x10] sm:$0xff] }
 0x14f   : > { %v2970_v58 = vsel %vm2901_vm2, %v633_v49, -1e+30  ;;  %v2982_v61 = vsel %vm2901_vm2, %v665_v55, -1e+30  ;;  %vm1132_vm7 = vcmp.eq.s32.totalorder %v2891_v52, %v1098_v9  ;;  %vm1133_vm8 = vcmp.eq.s32.totalorder %v2891_v52, %v1101_v54  ;;  %v3057_v55 = vld [vmem:[#allocation2 + $0x18] sm:$0xff]  ;;  %4419 = vst [vmem:[#allocation47_spill] sm:$0xff] %v3074_v4 }
 0x150   : > { %v2994_v5 = vsel %vm2901_vm2, %v625_v62, -1e+30  ;;  %v3005_v11 = vsel %vm2901_vm2, %v657_v6, -1e+30  ;;  %v1149_v12 = vsel %vm1133_vm8, %v2970_v58, 0.0  ;;  %v1148_v13 = vsel %vm1132_vm7, %v2966_v56, 0.0 }
 0x151   : > { %v1147_v57 = vsel %vm1131_vm9, %v2994_v5, 0.0  ;;  %v1146_v14 = vsel %vm1130_vm10, %v2989_v1, 0.0  ;;  %4415 = vst [vmem:[#allocation43_spill] sm:$0xff] %v3057_v55  ;;  %v3085_v54 = vld [vmem:[#allocation2 + $0x40] sm:$0xff]  ;;  %v3108_v9 = vld [vmem:[#allocation2 + $0x48] sm:$0xff] }
 0x152   : > { %743 = vmax.xlane.f32.xlu1 %v2945_v34  ;;  %1162 = vadd.xlane.f32.xlu0 %v1144_v37  ;;  %v3017_v15 = vpop.permute.xlu1 %1103  ;;  %v3019_v20 = vpop.permute.xlu0 %1106  ;;  %v3033_v37 = vld [vmem:[#allocation2 + $0x50] sm:$0xff]  ;;  %4421 = vst [vmem:[#allocation49_spill] sm:$0xff] %v3085_v54  ;;  %4426 = vst [vmem:[#allocation54_spill] sm:$0xff] %v3108_v9 }
 0x156   : > { %1164 = vadd.xlane.f32.xlu1 %v1145_v41  ;;  %1158 = vadd.xlane.f32.xlu0 %v1142_v42  ;;  %v3021_v21 = vpop.permute.xlu1 %1109  ;;  %v3023_v23 = vpop.permute.xlu0 %1112 }
 0x15a   : > { %1160 = vadd.xlane.f32.xlu1 %v1143_v50  ;;  %727 = vmax.xlane.f32.xlu0 %v2956_v45  ;;  %v3025_v26 = vpop.permute.xlu1 %1115  ;;  %v3027_v29 = vpop.permute.xlu0 %1118  ;;  %v3051_v50 = vld [vmem:[#allocation2] sm:$0xff] }
 0x15b   : > { %4410 = vst [vmem:[#allocation38_spill] sm:$0xff] %v3027_v29  ;;  %4414 = vst [vmem:[#allocation42_spill] sm:$0xff] %v3051_v50 }
 0x15e   : > { %739 = vmax.xlane.f32.xlu1 %v2970_v58  ;;  %737 = vmax.xlane.f32.xlu0 %v2966_v56  ;;  %v3029_v30 = vpop.permute.xlu1 %1121  ;;  %v3031_v33 = vpop.permute.xlu0 %1124 }
 0x15f   : > { %4411 = vst [vmem:[#allocation39_spill] sm:$0xff] %v3031_v33 }
 0x162   : > { %755 = vmax.xlane.f32.xlu1 %v2982_v61  ;;  %753 = vmax.xlane.f32.xlu0 %v2977_v59 }
 0x166   : > { %735 = vmax.xlane.f32.xlu1 %v2994_v5  ;;  %733 = vmax.xlane.f32.xlu0 %v2989_v1 }
 0x16a   : > { %751 = vmax.xlane.f32.xlu1 %v3005_v11  ;;  %749 = vmax.xlane.f32.xlu0 %v3001_v10 }
 0x16e   : > { %1172 = vadd.xlane.f32.xlu1 %v1149_v12  ;;  %1170 = vadd.xlane.f32.xlu0 %v1148_v13 }
 0x172   : > { %1168 = vadd.xlane.f32.xlu1 %v1147_v57  ;;  %1166 = vadd.xlane.f32.xlu0 %v1146_v14 }
 0x1d3   : > { %v3037_v41 = vpop.xlane.xlu0 %745  ;;  %v3039_v42 = vpop.xlane.xlu1 %729 }
 0x1d4   : > { %4412 = vst [vmem:[#allocation40_spill] sm:$0xff] %v3037_v41  ;;  %4413 = vst [vmem:[#allocation41_spill] sm:$0xff] %v3039_v42  ;;  %v3043_v46 = vmax.f32 %v3033_v37, %v3037_v41  ;;  %vm1488_vm12 = vcmp.gt.f32.partialorder %v3037_v41, %v3033_v37  ;;  %v3049_v49 = vmax.f32 %v3035_v38, %v3039_v42 }
 0x1d5   : > { %vm1224_vm8 = vcmp.eq.f32.partialorder %v2910_v2, %v3039_v42  ;;  %vm1232_vm10 = vcmp.eq.f32.partialorder %v2914_v3, %v3037_v41 }
 0x1d6   : > { %1568 = vst.msk [vmem:[#allocation2 + $0x50] sm:$0xff] %vm4360_vm11, %v3043_v46  ;;  %1560 = vst.msk [vmem:[#allocation2 + $0x10] sm:$0xff] %vm4360_vm11, %v3049_v49  ;;  %801 = vperm.xlu1 %2299, %v3049_v49   ;;  %v3250_v42 = vsel %vm1224_vm8, %v2891_v52, 2147483647 }
 0x1d7   : > { %v3064_v62 = vpop.xlane.xlu1 %731  ;;  %v3066_v63 = vpop.xlane.xlu0 %725 }
 0x1d8   : > { %4416 = vst [vmem:[#allocation44_spill] sm:$0xff] %v3064_v62  ;;  %4417 = vst [vmem:[#allocation45_spill] sm:$0xff] %v3066_v63  ;;  %v3070_v0 = vmax.f32 %v3051_v50, %v3066_v63  ;;  %vm1478_vm13 = vcmp.gt.f32.partialorder %v3066_v63, %v3051_v50  ;;  %v3078_v6 = vmax.f32 %v3057_v55, %v3064_v62 }
 0x1d9   : > { %vm1222_vm9 = vcmp.eq.f32.partialorder %v2921_v7, %v3066_v63 }
 0x1da   : > { %4418 = vst [vmem:[#allocation46_spill] sm:$0xff] %v3070_v0  ;;  %4420 = vst [vmem:[#allocation48_spill] sm:$0xff] %v3078_v6  ;;  %791 = vperm.xlu0 %2298, %v3070_v0   ;;  %841 = vperm.xlu1 %2299, %v3043_v46  }
 0x1db   : > { %1558 = vst.msk [vmem:[#allocation2] sm:$0xff] %vm4360_vm11, %v3070_v0  ;;  %v3088_v12 = vpop.xlane.xlu1 %747  ;;  %v3090_v13 = vpop.xlane.xlu0 %741  ;;  %1561 = vst.msk [vmem:[#allocation2 + $0x18] sm:$0xff] %vm4360_vm11, %v3078_v6  ;;  %v1283_v0 = vshra.s32 %v3250_v42, 16 }
 0x1dc   : > { %4422 = vst [vmem:[#allocation50_spill] sm:$0xff] %v3088_v12  ;;  %4423 = vst [vmem:[#allocation51_spill] sm:$0xff] %v3090_v13  ;;  %v3098_v14 = vmax.f32 %v3074_v4, %v3088_v12  ;;  %vm1489_vm14 = vcmp.gt.f32.partialorder %v3088_v12, %v3074_v4  ;;  %v3104_v51 = vmax.f32 %v3085_v54, %v3090_v13  ;;  %v1067_v4 = vld [vmem:[#allocation4 + $0x28] sm:$0xff] }
 0x1dd   : > { %vm1486_vm15 = vcmp.gt.f32.partialorder %v3090_v13, %v3085_v54  ;;  %vm1230_vm8 = vcmp.eq.f32.partialorder %v2933_v24, %v3090_v13 }
 0x1de   : > { %4424 = vst [vmem:[#allocation52_spill] sm:$0xff] %v3098_v14  ;;  %4425 = vst [vmem:[#allocation53_spill] sm:$0xff] %v3104_v51  ;;  %846 = vperm.xlu0 %2298, %v3098_v14   ;;  %831 = vperm.xlu1 %2299, %v3104_v51  }
 0x1df   : > { %1569 = vst.msk [vmem:[#allocation2 + $0x58] sm:$0xff] %vm4360_vm11, %v3098_v14  ;;  %1566 = vst.msk [vmem:[#allocation2 + $0x40] sm:$0xff] %vm4360_vm11, %v3104_v51  ;;  %v3120_v48 = vpop.xlane.xlu1 %743  ;;  %v1163_v47 = vpop.xlane.xlu0 %1162  ;;  %v1068_v14 = vld [vmem:[#allocation4 + $0x30] sm:$0xff]  ;;  %v3276_v51 = vcvt.s32.f32 %v1283_v0 }
 0x1e0   : > { %4427 = vst [vmem:[#allocation55_spill] sm:$0xff] %v3120_v48  ;;  %v3124_v57 = vmax.f32 %v3108_v9, %v3120_v48  ;;  %vm1487_vm0 = vcmp.gt.f32.partialorder %v3120_v48, %v3108_v9  ;;  %v1192_v44 = vadd.f32 %v1163_v47, %v1064_v53  ;;  %v3135_v47 = vld [vmem:[#allocation2 + $0x8] sm:$0xff] }
 0x1e1   : > { %4429 = vst [vmem:[#allocation57_spill] sm:$0xff] %v3135_v47 }
 0x1e2   : > { %4428 = vst [vmem:[#allocation56_spill] sm:$0xff] %v3124_v57  ;;  %1567 = vst.msk [vmem:[#allocation2 + $0x48] sm:$0xff] %vm4360_vm11, %v3124_v57  ;;  %836 = vperm.xlu0 %2298, %v3124_v57   ;;  %806 = vperm.xlu1 %2299, %v3078_v6  }
 0x1e3   : > { %1208 = vst.msk [vmem:[#allocation4 + $0x10] sm:$0xff] %vm4360_vm11, %v1192_v44  ;;  %v1165_v39 = vpop.xlane.xlu1 %1164  ;;  %v1159_v36 = vpop.xlane.xlu0 %1158 }
 0x1e4   : > { %v1193_v35 = vadd.f32 %v1165_v39, %v1065_v43  ;;  %v1190_v31 = vadd.f32 %v1159_v36, %v1062_v40  ;;  %v3147_v39 = vld [vmem:[#allocation2 + $0x38] sm:$0xff] }
 0x1e5   : > { %4432 = vst [vmem:[#allocation60_spill] sm:$0xff] %v3147_v39  ;;  %v3173_v43 = vld [vmem:[#allocation2 + $0x78] sm:$0xff] }
 0x1e6   : > { %1209 = vst.msk [vmem:[#allocation4 + $0x18] sm:$0xff] %vm4360_vm11, %v1193_v35  ;;  %1206 = vst.msk [vmem:[#allocation4] sm:$0xff] %vm4360_vm11, %v1190_v31  ;;  %v3155_v31 = vld [vmem:[#allocation2 + $0x30] sm:$0xff]  ;;  %v3199_v35 = vld [vmem:[#allocation2 + $0x28] sm:$0xff] }
 0x1e7   : > { %v1161_v53 = vpop.xlane.xlu1 %1160  ;;  %v3139_v60 = vpop.xlane.xlu0 %727  ;;  %4433 = vst [vmem:[#allocation61_spill] sm:$0xff] %v3155_v31  ;;  %4438 = vst [vmem:[#allocation66_spill] sm:$0xff] %v3173_v43 }
 0x1e8   : > { %4430 = vst [vmem:[#allocation58_spill] sm:$0xff] %v3139_v60  ;;  %v1191_v28 = vadd.f32 %v1161_v53, %v1063_v32  ;;  %v3143_v44 = vmax.f32 %v3135_v47, %v3139_v60  ;;  %vm1479_vm1 = vcmp.gt.f32.partialorder %v3139_v60, %v3135_v47  ;;  %v3177_v53 = vld [vmem:[#allocation2 + $0x70] sm:$0xff]  ;;  %4444 = vst [vmem:[#allocation72_spill] sm:$0xff] %v3199_v35  ;;  %v3270_v47 = vsel %vm1232_vm10, %v2891_v52, 2147483647 }
 0x1e9   : > { %4439 = vst [vmem:[#allocation67_spill] sm:$0xff] %v3177_v53  ;;  %v1395_v54 = vshra.s32 %v3270_v47, 16  ;;  %vm1223_vm10 = vcmp.eq.f32.partialorder %v2956_v45, %v3139_v60 }
 0x1ea   : > { %4431 = vst [vmem:[#allocation59_spill] sm:$0xff] %v3143_v44  ;;  %1207 = vst.msk [vmem:[#allocation4 + $0x8] sm:$0xff] %vm4360_vm11, %v1191_v28  ;;  %796 = vperm.xlu1 %2299, %v3143_v44  }
 0x1eb   : > { %1559 = vst.msk [vmem:[#allocation2 + $0x8] sm:$0xff] %vm4360_vm11, %v3143_v44  ;;  %v3157_v32 = vpop.xlane.xlu1 %739  ;;  %v3159_v36 = vpop.xlane.xlu0 %737 }
 0x1ec   : > { %4434 = vst [vmem:[#allocation62_spill] sm:$0xff] %v3157_v32  ;;  %4435 = vst [vmem:[#allocation63_spill] sm:$0xff] %v3159_v36  ;;  %v3163_v40 = vmax.f32 %v3147_v39, %v3157_v32  ;;  %vm1485_vm2 = vcmp.gt.f32.partialorder %v3157_v32, %v3147_v39  ;;  %v3169_v28 = vmax.f32 %v3155_v31, %v3159_v36  ;;  %v3205_v39 = vld [vmem:[#allocation2 + $0x20] sm:$0xff] }
 0x1ed   : > { %vm1484_vm3 = vcmp.gt.f32.partialorder %v3159_v36, %v3155_v31  ;;  %4445 = vst [vmem:[#allocation73_spill] sm:$0xff] %v3205_v39  ;;  %v3227_v31 = vld [vmem:[#allocation2 + $0x68] sm:$0xff] }
 0x1ee   : > { %4436 = vst [vmem:[#allocation64_spill] sm:$0xff] %v3163_v40  ;;  %4437 = vst [vmem:[#allocation65_spill] sm:$0xff] %v3169_v28 }
 0x1ef   : > { %1565 = vst.msk [vmem:[#allocation2 + $0x38] sm:$0xff] %vm4360_vm11, %v3163_v40  ;;  %1564 = vst.msk [vmem:[#allocation2 + $0x30] sm:$0xff] %vm4360_vm11, %v3169_v28  ;;  %v3183_v27 = vpop.xlane.xlu1 %755  ;;  %v3185_v22 = vpop.xlane.xlu0 %753 }
 0x1f0   : > { %4440 = vst [vmem:[#allocation68_spill] sm:$0xff] %v3183_v27  ;;  %4441 = vst [vmem:[#allocation69_spill] sm:$0xff] %v3185_v22  ;;  %v3189_v19 = vmax.f32 %v3173_v43, %v3183_v27  ;;  %vm1493_vm4 = vcmp.gt.f32.partialorder %v3183_v27, %v3173_v43  ;;  %v3195_v17 = vmax.f32 %v3177_v53, %v3185_v22  ;;  %v3233_v43 = vld [vmem:[#allocation2 + $0x60] sm:$0xff] }
 0x1f1   : > { %vm1492_vm5 = vcmp.gt.f32.partialorder %v3185_v22, %v3177_v53  ;;  %4450 = vst [vmem:[#allocation78_spill] sm:$0xff] %v3227_v31  ;;  %4451 = vst [vmem:[#allocation79_spill] sm:$0xff] %v3233_v43 }
 0x1f2   : > { %4442 = vst [vmem:[#allocation70_spill] sm:$0xff] %v3189_v19  ;;  %4443 = vst [vmem:[#allocation71_spill] sm:$0xff] %v3195_v17 }
 0x1f3   : > { %1573 = vst.msk [vmem:[#allocation2 + $0x78] sm:$0xff] %vm4360_vm11, %v3189_v19  ;;  %1572 = vst.msk [vmem:[#allocation2 + $0x70] sm:$0xff] %vm4360_vm11, %v3195_v17  ;;  %v3211_v16 = vpop.xlane.xlu1 %735  ;;  %v3213_v33 = vpop.xlane.xlu0 %733 }
 0x1f4   : > { %4446 = vst [vmem:[#allocation74_spill] sm:$0xff] %v3211_v16  ;;  %4447 = vst [vmem:[#allocation75_spill] sm:$0xff] %v3213_v33  ;;  %v3217_v57 = vmax.f32 %v3199_v35, %v3211_v16  ;;  %v3223_v18 = vmax.f32 %v3205_v39, %v3213_v33  ;;  %vm1482_vm7 = vcmp.gt.f32.partialorder %v3213_v33, %v3205_v39  ;;  %v1069_v39 = vld [vmem:[#allocation4 + $0x38] sm:$0xff] }
 0x1f6   : > { %4448 = vst [vmem:[#allocation76_spill] sm:$0xff] %v3217_v57  ;;  %4449 = vst [vmem:[#allocation77_spill] sm:$0xff] %v3223_v18 }
 0x1f7   : > { %1563 = vst.msk [vmem:[#allocation2 + $0x28] sm:$0xff] %vm4360_vm11, %v3217_v57  ;;  %1562 = vst.msk [vmem:[#allocation2 + $0x20] sm:$0xff] %vm4360_vm11, %v3223_v18  ;;  %v3239_v53 = vpop.xlane.xlu1 %751  ;;  %v3241_v9 = vpop.xlane.xlu0 %749 }
 0x1f8   : > { %4452 = vst [vmem:[#allocation80_spill] sm:$0xff] %v3239_v53  ;;  %4453 = vst [vmem:[#allocation81_spill] sm:$0xff] %v3241_v9  ;;  %v3245_v29 = vmax.f32 %v3227_v31, %v3239_v53  ;;  %v3256_v35 = vmax.f32 %v3233_v43, %v3241_v9  ;;  %vm1490_vm6 = vcmp.gt.f32.partialorder %v3241_v9, %v3233_v43  ;;  %v1066_v31 = vld [vmem:[#allocation4 + $0x20] sm:$0xff] }
 0x1fa   : > { %4454 = vst [vmem:[#allocation82_spill] sm:$0xff] %v3245_v29  ;;  %4455 = vst [vmem:[#allocation83_spill] sm:$0xff] %v3256_v35 }
 0x1fb   : > { %1571 = vst.msk [vmem:[#allocation2 + $0x68] sm:$0xff] %vm4360_vm11, %v3245_v29  ;;  %1570 = vst.msk [vmem:[#allocation2 + $0x60] sm:$0xff] %vm4360_vm11, %v3256_v35  ;;  %v1173_v41 = vpop.xlane.xlu1 %1172  ;;  %v1171_v55 = vpop.xlane.xlu0 %1170 }
 0x1fc   : > { %v1197_v50 = vadd.f32 %v1173_v41, %v1069_v39  ;;  %v1196_v44 = vadd.f32 %v1171_v55, %v1068_v14  ;;  %v3280_v14 = vsel %vm1230_vm8, %v2891_v52, 2147483647  ;;  %vm1225_vm8 = vcmp.eq.f32.partialorder %v2925_v8, %v3064_v62 }
 0x1fd   : > { %v1367_v0 = vshra.s32 %v3280_v14, 16 }
 0x1fe   : > { %1213 = vst.msk [vmem:[#allocation4 + $0x38] sm:$0xff] %vm4360_vm11, %v1197_v50  ;;  %1212 = vst.msk [vmem:[#allocation4 + $0x30] sm:$0xff] %vm4360_vm11, %v1196_v44  ;;  %v3289_v50 = vcvt.s32.f32 %v1395_v54 }
 0x1ff   : > { %v1169_v6 = vpop.xlane.xlu1 %1168  ;;  %v1167_v43 = vpop.xlane.xlu0 %1166  ;;  %v3301_v44 = vcvt.s32.f32 %v1367_v0 }
 0x200   : > { %v1195_v41 = vadd.f32 %v1169_v6, %v1067_v4  ;;  %v1194_v55 = vadd.f32 %v1167_v43, %v1066_v31  ;;  %v3293_v4 = vsel %vm1223_vm10, %v2891_v52, 2147483647  ;;  %v3297_v6 = vsel %vm1222_vm9, %v2891_v52, 2147483647 }
 0x201   : > { %1286 = vmin.xlane.f32.xlu0 %v3276_v51  ;;  %v1269_v39 = vshra.s32 %v3293_v4, 16  ;;  %v1255_v54 = vshra.s32 %v3297_v6, 16  ;;  %v3307_v31 = vsel %vm1225_vm8, %v2891_v52, 2147483647  ;;  %vm1233_vm10 = vcmp.eq.f32.partialorder %v2937_v25, %v3088_v12 }
 0x202   : > { %1211 = vst.msk [vmem:[#allocation4 + $0x28] sm:$0xff] %vm4360_vm11, %v1195_v41  ;;  %1210 = vst.msk [vmem:[#allocation4 + $0x20] sm:$0xff] %vm4360_vm11, %v1194_v55  ;;  %v1297_v55 = vshra.s32 %v3307_v31, 16  ;;  %v3318_v0 = vsel %vm1233_vm10, %v2891_v52, 2147483647  ;;  %vm1231_vm9 = vcmp.eq.f32.partialorder %v2945_v34, %v3120_v48  ;;  %vm1228_vm8 = vcmp.eq.f32.partialorder %v2966_v56, %v3159_v36 }
 0x203   : > { %v3311_v43 = vcvt.s32.f32 %v1269_v39  ;;  %v3313_v41 = vcvt.s32.f32 %v1255_v54  ;;  %v1409_v12 = vshra.s32 %v3318_v0, 16  ;;  %v3327_v39 = vsel %vm1231_vm9, %v2891_v52, 2147483647 }
 0x204   : > { %v3323_v60 = vcvt.s32.f32 %v1297_v55  ;;  %v1381_v62 = vshra.s32 %v3327_v39, 16  ;;  %vm1236_vm10 = vcmp.eq.f32.partialorder %v2977_v59, %v3185_v22  ;;  %vm1226_vm9 = vcmp.eq.f32.partialorder %v2989_v1, %v3213_v33 }
 0x205   : > { %1398 = vmin.xlane.f32.xlu0 %v3289_v50  ;;  %v3330_v54 = vcvt.s32.f32 %v1409_v12  ;;  %v3354_v55 = vsel %vm1236_vm10, %v2891_v52, 2147483647  ;;  %vm1134_vm10 = vcmp.eq.s32.totalorder %v2891_v52, %v3017_v15 }
 0x206   : > { %v3334_v63 = vcvt.s32.f32 %v1381_v62  ;;  %v3347_v62 = vsel %vm1228_vm8, %v2891_v52, 2147483647  ;;  %v1451_v36 = vshra.s32 %v3354_v55, 16  ;;  %vm1234_vm8 = vcmp.eq.f32.partialorder %v3001_v10, %v3241_v9 }
 0x207   : > { %v1339_v12 = vshra.s32 %v3347_v62, 16 }
 0x208   : > { %v3367_v22 = vcvt.s32.f32 %v1451_v36  ;;  %v1150_v36 = vsel %vm1134_vm10, %v2933_v24, 0.0  ;;  %vm1237_vm10 = vcmp.eq.f32.partialorder %v2982_v61, %v3183_v27 }
 0x209   : > { %1370 = vmin.xlane.f32.xlu0 %v3301_v44 }
 0x20d   : > { %1272 = vmin.xlane.f32.xlu0 %v3311_v43 }
 0x20e   : > { %1258 = vmin.xlane.f32.xlu1 %v3313_v41 }
 0x212   : > { %1300 = vmin.xlane.f32.xlu1 %v3323_v60 }
 0x216   : > { %1412 = vmin.xlane.f32.xlu1 %v3330_v54 }
 0x21a   : > { %1384 = vmin.xlane.f32.xlu1 %v3334_v63 }
 0x223   : > { %866 = vperm.xlu0 %2298, %v3189_v19   ;;  %v3362_v19 = vsel %vm1226_vm9, %v2891_v52, 2147483647  ;;  %vm1136_vm9 = vcmp.eq.s32.totalorder %v2891_v52, %v3021_v21 }
 0x227   : > { %856 = vperm.xlu0 %2298, %v3245_v29   ;;  %v3358_v29 = vcvt.s32.f32 %v1339_v12 }
 0x22b   : > { %821 = vperm.xlu1 %2299, %v3169_v28  }
 0x22f   : > { %861 = vperm.xlu1 %2299, %v3195_v17  }
 0x233   : > { %811 = vperm.xlu1 %2299, %v3223_v18  }
 0x237   : > { %851 = vperm.xlu1 %2299, %v3256_v35   ;;  %v3371_v35 = vsel %vm1234_vm8, %v2891_v52, 2147483647  ;;  %vm1229_vm8 = vcmp.eq.f32.partialorder %v2970_v58, %v3157_v32 }
 0x238   : > { %v1423_v33 = vshra.s32 %v3371_v35, 16  ;;  %v3391_v17 = vsel %vm1229_vm8, %v2891_v52, 2147483647  ;;  %vm1235_vm8 = vcmp.eq.f32.partialorder %v3005_v11, %v3239_v53 }
 0x23a   : > { %v3378_v18 = vcvt.s32.f32 %v1423_v33  ;;  %v1152_v33 = vsel %vm1136_vm9, %v2914_v3, 0.0  ;;  %vm1227_vm9 = vcmp.eq.f32.partialorder %v2994_v5, %v3211_v16 }
 0x23b   : > { %826 = vperm.xlu1 %2299, %v3163_v40  }
 0x23f   : > { %816 = vperm.xlu1 %2299, %v3217_v57   ;;  %v1311_v57 = vshra.s32 %v3362_v19, 16 }
 0x241   : > { %v3374_v12 = vcvt.s32.f32 %v1311_v57 }
 0x246   : > { %1342 = vmin.xlane.f32.xlu0 %v3358_v29 }
 0x24a   : > { %1454 = vmin.xlane.f32.xlu0 %v3367_v22 }
 0x24e   : > { %1314 = vmin.xlane.f32.xlu0 %v3374_v12 }
 0x252   : > { %1426 = vmin.xlane.f32.xlu0 %v3378_v18 }
 0x255   : > { %v802_v9 = vpop.permute.xlu1 %801 }
 0x256   : > { %1174 = vadd.xlane.f32.xlu0 %v1150_v36  ;;  %v871_v57 = vsub.f32 %v2910_v2, %v802_v9  ;;  %v1353_v36 = vshra.s32 %v3391_v17, 16  ;;  %v3398_v2 = vsel %vm1237_vm10, %v2891_v52, 2147483647  ;;  %vm1135_vm10 = vcmp.eq.s32.totalorder %v2891_v52, %v3019_v20 }
 0x258   : > { %v889_v40 = vmul.f32 1.442695, %v871_v57 }
 0x259   : > { %v842_v48 = vpop.permute.xlu1 %841 }
 0x25a   : > { %1178 = vadd.xlane.f32.xlu0 %v1152_v33  ;;  %2310 = vpow2.f32 %v889_v40  ;;  %v879_v15 = vsub.f32 %v2914_v3, %v842_v48  ;;  %v3403_v33 = vcvt.s32.f32 %v1353_v36  ;;  %v1465_v40 = vshra.s32 %v3398_v2, 16 }
 0x25b   : > { %v3407_v48 = vsel %vm1227_vm9, %v2891_v52, 2147483647  ;;  %vm1137_vm9 = vcmp.eq.s32.totalorder %v2891_v52, %v3023_v23 }
 0x25c   : > { %v905_v21 = vmul.f32 1.442695, %v879_v15  ;;  %4456 = vst [vmem:[#allocation84_spill] sm:$0xff] %v3403_v33  ;;  %4457 = vst [vmem:[#allocation85_spill] sm:$0xff] %v3407_v48  ;;  %v792_v15 = vpop.permute.xlu0 %791 }
 0x25d   : > { %v832_v32 = vpop.permute.xlu1 %831  ;;  %v869_v36 = vsub.f32 %v2921_v7, %v792_v15  ;;  %v1151_v15 = vsel %vm1135_vm10, %v2945_v34, 0.0 }
 0x25e   : > { %2312 = vpow2.f32 %v905_v21  ;;  %v877_v9 = vsub.f32 %v2933_v24, %v832_v32  ;;  %v3412_v21 = vcvt.s32.f32 %v1465_v40  ;;  %v1325_v24 = vshra.s32 %v3407_v48, 16 }
 0x25f   : > { %v3416_v32 = vsel %vm1235_vm8, %v2891_v52, 2147483647 }
 0x260   : > { %v901_v57 = vmul.f32 1.442695, %v877_v9  ;;  %4458 = vst [vmem:[#allocation86_spill] sm:$0xff] %v3412_v21  ;;  %v1437_v27 = vshra.s32 %v3416_v32, 16  ;;  %v847_v40 = vpop.permute.xlu0 %846 }
 0x261   : > { %v807_v16 = vpop.permute.xlu1 %806  ;;  %v880_v7 = vsub.f32 %v2937_v25, %v847_v40 }
 0x262   : > { %2314 = vpow2.f32 %v901_v57  ;;  %v3420_v57 = vcvt.s32.f32 %v1325_v24  ;;  %v872_v13 = vsub.f32 %v2925_v8, %v807_v16  ;;  %v1153_v8 = vsel %vm1137_vm9, %v2937_v25, 0.0 }
 0x263   : > { %1356 = vmin.xlane.f32.xlu1 %v3403_v33  ;;  %v907_v16 = vmul.f32 1.442695, %v880_v7  ;;  %v1282_v24 = vand.u32 65535, %v3250_v42  ;;  %v1394_v25 = vand.u32 65535, %v3270_v47  ;;  %v1366_v7 = vand.u32 65535, %v3280_v14 }
 0x264   : > { %v2311_v3 = vpop.eup %2310  ;;  %v1296_v14 = vand.u32 65535, %v3307_v31  ;;  %v1380_v31 = vand.u32 65535, %v3327_v39 }
 0x265   : > { %1001 = vadd.xlane.f32.xlu0 %v2311_v3  ;;  %v885_v3 = vmul.f32 1.442695, %v869_v36 }
 0x267   : > { %1468 = vmin.xlane.f32.xlu1 %v3412_v21  ;;  %v3426_v21 = vcvt.s32.f32 %v1437_v27 }
 0x268   : > { %v2313_v9 = vpop.eup %2312 }
 0x269   : > { %v797_v53 = vpop.permute.xlu1 %796  ;;  %1017 = vadd.xlane.f32.xlu0 %v2313_v9 }
 0x26a   : > { %v870_v28 = vsub.f32 %v2956_v45, %v797_v53  ;;  %v891_v45 = vmul.f32 1.442695, %v872_v13  ;;  %v837_v53 = vpop.permute.xlu0 %836 }
 0x26b   : > { %1328 = vmin.xlane.f32.xlu1 %v3420_v57  ;;  %v878_v27 = vsub.f32 %v2945_v34, %v837_v53  ;;  %v1284_v34 = vcvt.s32.f32 %v1282_v24  ;;  %v1368_v53 = vcvt.s32.f32 %v1366_v7 }
 0x26c   : > { %v887_v48 = vmul.f32 1.442695, %v870_v28  ;;  %v2315_v33 = vpop.eup %2314 }
 0x26d   : > { %1013 = vadd.xlane.f32.xlu0 %v2315_v33  ;;  %v903_v28 = vmul.f32 1.442695, %v878_v27 }
 0x26e   : > { %2316 = vpow2.f32 %v887_v48 }
 0x26f   : > { %1440 = vmin.xlane.f32.xlu1 %v3426_v21  ;;  %2318 = vpow2.f32 %v885_v3  ;;  %v1396_v3 = vcvt.s32.f32 %v1394_v25 }
 0x270   : > { %2320 = vpow2.f32 %v891_v45 }
 0x271   : > { %2322 = vpow2.f32 %v907_v16 }
 0x272   : > { %2324 = vpow2.f32 %v903_v28 }
 0x273   : > { %1176 = vadd.xlane.f32.xlu1 %v1151_v15 }
 0x277   : > { %1180 = vadd.xlane.f32.xlu1 %v1153_v8  ;;  %v1298_v8 = vcvt.s32.f32 %v1296_v14  ;;  %v1268_v14 = vand.u32 65535, %v3293_v4 }
 0x278   : > { %v2317_v20 = vpop.eup %2316 }
 0x279   : > { %999 = vadd.xlane.f32.xlu0 %v2317_v20  ;;  %v2319_v33 = vpop.eup %2318  ;;  %v1408_v20 = vand.u32 65535, %v3318_v0 }
 0x27a   : > { %v2321_v13 = vpop.eup %2320 }
 0x27b   : > { %997 = vadd.xlane.f32.xlu1 %v2319_v33  ;;  %v2323_v48 = vpop.eup %2322  ;;  %v1410_v28 = vcvt.s32.f32 %v1408_v20 }
 0x27c   : > { %v2325_v23 = vpop.eup %2324 }
 0x27f   : > { %1003 = vadd.xlane.f32.xlu1 %v2321_v13  ;;  %v1382_v13 = vcvt.s32.f32 %v1380_v31 }
 0x283   : > { %1019 = vadd.xlane.f32.xlu1 %v2323_v48 }
 0x287   : > { %1015 = vadd.xlane.f32.xlu1 %v2325_v23 }
 0x28e   : > { %v3438_v36 = vpop.xlane.xlu0 %1286 }
 0x28f   : > { %vm1288_vm8 = vcmp.eq.f32.partialorder %v3276_v51, %v3438_v36  ;;  %v1254_v51 = vand.u32 65535, %v3297_v6 }
 0x290   : > { %v1289_v9 = vsel %vm1288_vm8, %v1284_v34, inf }
 0x291   : > { %1290 = vmin.xlane.f32.xlu0 %v1289_v9  ;;  %v1256_v16 = vcvt.s32.f32 %v1254_v51 }
 0x292   : > { %v3443_v40 = vpop.xlane.xlu0 %1398 }
 0x293   : > { %vm1400_vm10 = vcmp.eq.f32.partialorder %v3289_v50, %v3443_v40 }
 0x294   : > { %v1401_v45 = vsel %vm1400_vm10, %v1396_v3, inf }
 0x295   : > { %1402 = vmin.xlane.f32.xlu0 %v1401_v45 }
 0x296   : > { %v3448_v42 = vpop.xlane.xlu0 %1370 }
 0x297   : > { %vm1372_vm9 = vcmp.eq.f32.partialorder %v3301_v44, %v3448_v42 }
 0x298   : > { %v1373_v47 = vsel %vm1372_vm9, %v1368_v53, inf }
 0x299   : > { %1374 = vmin.xlane.f32.xlu0 %v1373_v47 }
 0x29a   : > { %v3475_v9 = vpop.xlane.xlu0 %1272 }
 0x29b   : > { %v3453_v15 = vpop.xlane.xlu1 %1258 }
 0x29c   : > { %vm1260_vm8 = vcmp.eq.f32.partialorder %v3313_v41, %v3453_v15 }
 0x29d   : > { %v1261_v50 = vsel %vm1260_vm8, %v1256_v16, inf }
 0x29e   : > { %1262 = vmin.xlane.f32.xlu1 %v1261_v50 }
 0x29f   : > { %v3458_v27 = vpop.xlane.xlu1 %1300 }
 0x2a0   : > { %vm1302_vm10 = vcmp.eq.f32.partialorder %v3323_v60, %v3458_v27 }
 0x2a1   : > { %v1303_v6 = vsel %vm1302_vm10, %v1298_v8, inf  ;;  %vm1274_vm10 = vcmp.eq.f32.partialorder %v3311_v43, %v3475_v9 }
 0x2a2   : > { %1304 = vmin.xlane.f32.xlu1 %v1303_v6  ;;  %v867_v45 = vpop.permute.xlu0 %866 }
 0x2a3   : > { %v3463_v44 = vpop.xlane.xlu1 %1412  ;;  %v884_v47 = vsub.f32 %v2982_v61, %v867_v45  ;;  %v1422_v45 = vand.u32 65535, %v3371_v35  ;;  %v1070_v35 = vld [vmem:[#allocation4 + $0x40] sm:$0xff] }
 0x2a4   : > { %vm1414_vm9 = vcmp.eq.f32.partialorder %v3330_v54, %v3463_v44 }
 0x2a5   : > { %v1415_v41 = vsel %vm1414_vm9, %v1410_v28, inf  ;;  %v915_v20 = vmul.f32 1.442695, %v884_v47  ;;  %v1270_v28 = vcvt.s32.f32 %v1268_v14  ;;  %v4460_v14 = vsub.f32 %v3033_v37, %v3043_v46  ;;  %v1510_v37 = vld [vmem:[#allocation5] sm:$0xff] }
 0x2a6   : > { %1416 = vmin.xlane.f32.xlu1 %v1415_v41  ;;  %v857_v31 = vpop.permute.xlu0 %856 }
 0x2a7   : > { %v3468_v33 = vpop.xlane.xlu1 %1384  ;;  %v1275_v41 = vsel %vm1274_vm10, %v1270_v28, inf }
 0x2a8   : > { %vm1386_vm8 = vcmp.eq.f32.partialorder %v3334_v63, %v3468_v33 }
 0x2a9   : > { %v1387_v0 = vsel %vm1386_vm8, %v1382_v13, inf }
 0x2aa   : > { %1388 = vmin.xlane.f32.xlu1 %v1387_v0 }
 0x2ab   : > { %v822_v60 = vpop.permute.xlu1 %821 }
 0x2ac   : > { %v875_v48 = vsub.f32 %v2966_v56, %v822_v60 }
 0x2ae   : > { %v897_v23 = vmul.f32 1.442695, %v875_v48 }
 0x2af   : > { %v862_v24 = vpop.permute.xlu1 %861 }
 0x2b0   : > { %2326 = vpow2.f32 %v897_v23  ;;  %v883_v39 = vsub.f32 %v2977_v59, %v862_v24 }
 0x2b2   : > { %v913_v34 = vmul.f32 1.442695, %v883_v39 }
 0x2b3   : > { %v812_v54 = vpop.permute.xlu1 %811 }
 0x2b4   : > { %2328 = vpow2.f32 %v913_v34  ;;  %v873_v25 = vsub.f32 %v2989_v1, %v812_v54  ;;  %v1450_v34 = vand.u32 65535, %v3354_v55 }
 0x2b6   : > { %v893_v7 = vmul.f32 1.442695, %v873_v25 }
 0x2b7   : > { %v852_v3 = vpop.permute.xlu1 %851 }
 0x2b8   : > { %v881_v63 = vsub.f32 %v3001_v10, %v852_v3  ;;  %2330 = vpow2.f32 %v893_v7  ;;  %v1310_v3 = vand.u32 65535, %v3362_v19 }
 0x2ba   : > { %v2327_v53 = vpop.eup %2326  ;;  %v909_v51 = vmul.f32 1.442695, %v881_v63  ;;  %v1452_v63 = vcvt.s32.f32 %v1450_v34  ;;  %v4468_v34 = vld [vmem:[#allocation85_spill] sm:$0xff] }
 0x2bb   : > { %v827_v56 = vpop.permute.xlu1 %826  ;;  %1009 = vadd.xlane.f32.xlu0 %v2327_v53  ;;  %v1312_v53 = vcvt.s32.f32 %v1310_v3 }
 0x2bc   : > { %v876_v16 = vsub.f32 %v2970_v58, %v827_v56  ;;  %2332 = vpow2.f32 %v909_v51  ;;  %v882_v58 = vsub.f32 %v3005_v11, %v857_v31  ;;  %v1424_v51 = vcvt.s32.f32 %v1422_v45  ;;  %v4471_v45 = vld [vmem:[#allocation46_spill] sm:$0xff] }
 0x2be   : > { %v2329_v50 = vpop.eup %2328  ;;  %v899_v1 = vmul.f32 1.442695, %v876_v16  ;;  %v911_v0 = vmul.f32 1.442695, %v882_v58 }
 0x2bf   : > { %v817_v8 = vpop.permute.xlu1 %816  ;;  %1025 = vadd.xlane.f32.xlu0 %v2329_v50  ;;  %v969_v50 = vmul.f32 1.442695, %v4460_v14 }
 0x2c0   : > { %2334 = vpow2.f32 %v899_v1  ;;  %v874_v6 = vsub.f32 %v2994_v5, %v817_v8  ;;  %v1338_v5 = vand.u32 65535, %v3347_v62 }
 0x2c1   : > { %2336 = vpow2.f32 %v915_v20  ;;  %v4461_v20 = vld [vmem:[#allocation49_spill] sm:$0xff] }
 0x2c2   : > { %v895_v4 = vmul.f32 1.442695, %v874_v6  ;;  %v2331_v13 = vpop.eup %2330  ;;  %v1340_v39 = vcvt.s32.f32 %v1338_v5  ;;  %v4465_v5 = vld [vmem:[#allocation57_spill] sm:$0xff] }
 0x2c3   : > { %1276 = vmin.xlane.f32.xlu0 %v1275_v41  ;;  %v1464_v41 = vand.u32 65535, %v3398_v2 }
 0x2c4   : > { %2338 = vpow2.f32 %v895_v4 }
 0x2c5   : > { %2340 = vpow2.f32 %v911_v0  ;;  %v1466_v3 = vcvt.s32.f32 %v1464_v41 }
 0x2c6   : > { %v2333_v60 = vpop.eup %2332 }
 0x2c7   : > { %1005 = vadd.xlane.f32.xlu0 %v2331_v13  ;;  %v4464_v13 = vld [vmem:[#allocation84_spill] sm:$0xff] }
 0x2ca   : > { %v2335_v48 = vpop.eup %2334 }
 0x2cb   : > { %1011 = vadd.xlane.f32.xlu1 %v2335_v48  ;;  %1021 = vadd.xlane.f32.xlu0 %v2333_v60  ;;  %v2337_v43 = vpop.eup %2336 }
 0x2ce   : > { %v2339_v23 = vpop.eup %2338 }
 0x2cf   : > { %1027 = vadd.xlane.f32.xlu1 %v2337_v43  ;;  %v2341_v25 = vpop.eup %2340  ;;  %v927_v43 = vld [vmem:[#allocation3 + $0x50] sm:$0xff] }
 0x2d3   : > { %1007 = vadd.xlane.f32.xlu1 %v2339_v23  ;;  %v3486_v24 = vpop.xlane.xlu0 %1342  ;;  %v4466_v23 = vld [vmem:[#allocation59_spill] sm:$0xff] }
 0x2d4   : > { %vm1344_vm9 = vcmp.eq.f32.partialorder %v3358_v29, %v3486_v24 }
 0x2d5   : > { %v1345_v54 = vsel %vm1344_vm9, %v1340_v39, inf }
 0x2d6   : > { %1346 = vmin.xlane.f32.xlu0 %v1345_v54  ;;  %v1324_v54 = vand.u32 65535, %v4468_v34  ;;  %v1073_v34 = vld [vmem:[#allocation4 + $0x58] sm:$0xff] }
 0x2d7   : > { %1023 = vadd.xlane.f32.xlu1 %v2341_v25  ;;  %v3492_v7 = vpop.xlane.xlu0 %1454 }
 0x2d8   : > { %vm1456_vm8 = vcmp.eq.f32.partialorder %v3367_v22, %v3492_v7  ;;  %v4459_v22 = vsub.f32 %v3035_v38, %v3049_v49 }
 0x2d9   : > { %v1457_v62 = vsel %vm1456_vm8, %v1452_v63, inf  ;;  %vm1138_vm8 = vcmp.eq.s32.totalorder %v2891_v52, %v3025_v26  ;;  %v4462_v26 = vld [vmem:[#allocation53_spill] sm:$0xff]  ;;  %v4469_v63 = vld [vmem:[#allocation86_spill] sm:$0xff] }
 0x2da   : > { %1458 = vmin.xlane.f32.xlu0 %v1457_v62  ;;  %v953_v56 = vmul.f32 1.442695, %v4459_v22  ;;  %v1154_v1 = vsel %vm1138_vm8, %v3001_v10, 0.0  ;;  %v4463_v6 = vsub.f32 %v4461_v20, %v4462_v26  ;;  %v1352_v10 = vand.u32 65535, %v3391_v17  ;;  %v4470_v62 = vld [vmem:[#allocation42_spill] sm:$0xff]  ;;  %v1513_v20 = vld [vmem:[#allocation5 + $0x18] sm:$0xff] }
 0x2db   : > { %v3497_v55 = vpop.xlane.xlu0 %1314  ;;  %v4467_v17 = vsub.f32 %v4465_v5, %v4466_v23  ;;  %v4481_v23 = vld [vmem:[#allocation56_spill] sm:$0xff] }
 0x2dc   : > { %vm1316_vm10 = vcmp.eq.f32.partialorder %v3374_v12, %v3497_v55  ;;  %2342 = vpow2.f32 %v953_v56  ;;  %v965_v28 = vmul.f32 1.442695, %v4463_v6  ;;  %v1354_v4 = vcvt.s32.f32 %v1352_v10 }
 0x2dd   : > { %v1317_v29 = vsel %vm1316_vm10, %v1312_v53, inf  ;;  %vm1140_vm10 = vcmp.eq.s32.totalorder %v2891_v52, %v3029_v30  ;;  %2344 = vpow2.f32 %v969_v50  ;;  %v919_v30 = vld [vmem:[#allocation3 + $0x10] sm:$0xff]  ;;  %v951_v39 = vmul.f32 1.442695, %v4467_v17 }
 0x2de   : > { %1318 = vmin.xlane.f32.xlu0 %v1317_v29  ;;  %v1156_v46 = vsel %vm1140_vm10, %v2977_v59, 0.0  ;;  %2346 = vpow2.f32 %v965_v28  ;;  %v4472_v53 = vsub.f32 %v4470_v62, %v4471_v45  ;;  %v1326_v50 = vcvt.s32.f32 %v1324_v54  ;;  %v918_v54 = vld [vmem:[#allocation3 + $0x8] sm:$0xff]  ;;  %v917_v45 = vld [vmem:[#allocation3] sm:$0xff] }
 0x2df   : > { %v3501_v19 = vpop.xlane.xlu0 %1426  ;;  %2348 = vpow2.f32 %v951_v39 }
 0x2e0   : > { %vm1428_vm9 = vcmp.eq.f32.partialorder %v3378_v18, %v3501_v19  ;;  %v1072_v18 = vld [vmem:[#allocation4 + $0x50] sm:$0xff]  ;;  %v949_v29 = vmul.f32 1.442695, %v4472_v53 }
 0x2e1   : > { %v1429_v47 = vsel %vm1428_vm9, %v1424_v51, inf }
 0x2e2   : > { %1430 = vmin.xlane.f32.xlu0 %v1429_v47  ;;  %2350 = vpow2.f32 %v949_v29 }
 0x2e3   : > { %v1175_v16 = vpop.xlane.xlu0 %1174 }
 0x2e4   : > { %v1198_v12 = vadd.f32 %v1175_v16, %v1070_v35  ;;  %v925_v35 = vld [vmem:[#allocation3 + $0x40] sm:$0xff]  ;;  %v1436_v16 = vand.u32 65535, %v3416_v32 }
 0x2e6   : > { %1214 = vst.msk [vmem:[#allocation4 + $0x40] sm:$0xff] %vm4360_vm11, %v1198_v12  ;;  %1182 = vadd.xlane.f32.xlu0 %v1154_v1  ;;  %v2343_v31 = vpop.eup %2342  ;;  %v4473_v1 = vld [vmem:[#allocation43_spill] sm:$0xff]  ;;  %v1438_v10 = vcvt.s32.f32 %v1436_v16 }
 0x2e7   : > { %v1179_v49 = vpop.xlane.xlu0 %1178  ;;  %v983_v0 = vmul.f32 %v2343_v31, %v919_v30  ;;  %v2345_v48 = vpop.eup %2344  ;;  %v4476_v31 = vld [vmem:[#allocation47_spill] sm:$0xff] }
 0x2e8   : > { %v1200_v8 = vadd.f32 %v1179_v49, %v1072_v18  ;;  %v991_v51 = vmul.f32 %v2345_v48, %v927_v43  ;;  %v2347_v56 = vpop.eup %2346  ;;  %v4474_v18 = vld [vmem:[#allocation48_spill] sm:$0xff]  ;;  %v4480_v43 = vld [vmem:[#allocation54_spill] sm:$0xff] }
 0x2e9   : > { %v4475_v49 = vsub.f32 %v4473_v1, %v4474_v18  ;;  %v989_v26 = vmul.f32 %v2347_v56, %v925_v35 }
 0x2ea   : > { %1216 = vst.msk [vmem:[#allocation4 + $0x50] sm:$0xff] %vm4360_vm11, %v1200_v8  ;;  %1186 = vadd.xlane.f32.xlu0 %v1156_v46 }
 0x2eb   : > { %v955_v8 = vmul.f32 1.442695, %v4475_v49  ;;  %v928_v49 = vld [vmem:[#allocation3 + $0x58] sm:$0xff] }
 0x2ed   : > { %2352 = vpow2.f32 %v955_v8 }
 0x2f0   : > { %v3524_v58 = vpop.xlane.xlu1 %1356 }
 0x2f1   : > { %vm1358_vm9 = vcmp.eq.f32.partialorder %v4464_v13, %v3524_v58  ;;  %v1071_v13 = vld [vmem:[#allocation4 + $0x48] sm:$0xff] }
 0x2f2   : > { %v1359_v60 = vsel %vm1358_vm9, %v1354_v4, inf  ;;  %v1002_v59 = vpop.xlane.xlu0 %1001 }
 0x2f3   : > { %1360 = vmin.xlane.f32.xlu1 %v1359_v60  ;;  %v1031_v25 = vadd.f32 %v1002_v59, %v983_v0  ;;  %v4479_v0 = vld [vmem:[#allocation38_spill] sm:$0xff]  ;;  %v2349_v59 = vpop.eup %2348 }
 0x2f4   : > { %v3532_v2 = vpop.xlane.xlu1 %1468  ;;  %v982_v29 = vmul.f32 %v2349_v59, %v918_v54  ;;  %v1512_v59 = vld [vmem:[#allocation5 + $0x10] sm:$0xff] }
 0x2f5   : > { %vm1470_vm8 = vcmp.eq.f32.partialorder %v4469_v63, %v3532_v2  ;;  %1048 = vst.msk [vmem:[#allocation3 + $0x10] sm:$0xff] %vm4360_vm11, %v1031_v25  ;;  %v4483_v25 = vld [vmem:[#allocation39_spill] sm:$0xff] }
 0x2f6   : > { %v1471_v22 = vsel %vm1470_vm8, %v1466_v3, inf  ;;  %v1018_v47 = vpop.xlane.xlu0 %1017  ;;  %vm1139_vm8 = vcmp.eq.s32.totalorder %v2891_v52, %v4479_v0  ;;  %v2351_v3 = vpop.eup %2350  ;;  %v1405_v0 = vcvt.f32.s32 %v3443_v40 }
 0x2f7   : > { %1472 = vmin.xlane.f32.xlu1 %v1471_v22  ;;  %v1039_v12 = vadd.f32 %v1018_v47, %v991_v51  ;;  %v1155_v39 = vsel %vm1139_vm8, %v3005_v11, 0.0  ;;  %v981_v56 = vmul.f32 %v2351_v3, %v917_v45  ;;  %v2353_v47 = vpop.eup %2352 }
 0x2f8   : > { %v3541_v14 = vpop.xlane.xlu1 %1328 }
 0x2f9   : > { %vm1330_vm10 = vcmp.eq.f32.partialorder %v3420_v57, %v3541_v14  ;;  %1056 = vst.msk [vmem:[#allocation3 + $0x50] sm:$0xff] %vm4360_vm11, %v1039_v12  ;;  %v4477_v57 = vld [vmem:[#allocation52_spill] sm:$0xff] }
 0x2fa   : > { %v1331_v6 = vsel %vm1330_vm10, %v1326_v50, inf  ;;  %v1014_v28 = vpop.xlane.xlu0 %1013  ;;  %v4478_v30 = vsub.f32 %v4476_v31, %v4477_v57  ;;  %vm1141_vm10 = vcmp.eq.s32.totalorder %v2891_v52, %v4483_v25  ;;  %v920_v52 = vld [vmem:[#allocation3 + $0x18] sm:$0xff]  ;;  %v4485_v25 = vld [vmem:[#allocation41_spill] sm:$0xff] }
 0x2fb   : > { %1332 = vmin.xlane.f32.xlu1 %v1331_v6  ;;  %v1037_v46 = vadd.f32 %v1014_v28, %v989_v26  ;;  %v1157_v51 = vsel %vm1141_vm10, %v2982_v61, 0.0  ;;  %v984_v12 = vmul.f32 %v2353_v47, %v920_v52  ;;  %v926_v28 = vld [vmem:[#allocation3 + $0x48] sm:$0xff]  ;;  %v1307_v52 = vcvt.f32.s32 %v3458_v27 }
 0x2fc   : > { %v3549_v32 = vpop.xlane.xlu1 %1440  ;;  %v971_v41 = vmul.f32 1.442695, %v4478_v30 }
 0x2fd   : > { %vm1442_vm9 = vcmp.eq.f32.partialorder %v3426_v21, %v3549_v32  ;;  %1054 = vst.msk [vmem:[#allocation3 + $0x40] sm:$0xff] %vm4360_vm11, %v1037_v46  ;;  %v4482_v21 = vsub.f32 %v4480_v43, %v4481_v23 }
 0x2fe   : > { %v1443_v4 = vsel %vm1442_vm9, %v1438_v10, inf  ;;  %2354 = vpow2.f32 %v971_v41  ;;  %v1293_v41 = vcvt.f32.s32 %v3438_v36  ;;  %vm1480_vm9 = vcmp.gt.f32.partialorder %v4485_v25, %v3035_v38  ;;  %v1520_v36 = vld [vmem:[#allocation5 + $0x50] sm:$0xff]  ;;  %v1518_v38 = vld [vmem:[#allocation5 + $0x40] sm:$0xff] }
 0x2ff   : > { %1444 = vmin.xlane.f32.xlu1 %v1443_v4  ;;  %v967_v17 = vmul.f32 1.442695, %v4482_v21  ;;  %v1406_v21 = vshll.u32 %v1405_v0, 16 }
 0x300   : > { %v1177_v60 = vpop.xlane.xlu1 %1176 }
 0x301   : > { %v1199_v48 = vadd.f32 %v1177_v60, %v1071_v13  ;;  %2356 = vpow2.f32 %v967_v17  ;;  %v1294_v13 = vshll.u32 %v1293_v41, 16  ;;  %v1377_v17 = vcvt.f32.s32 %v3448_v42 }
 0x303   : > { %1215 = vst.msk [vmem:[#allocation4 + $0x48] sm:$0xff] %vm4360_vm11, %v1199_v48  ;;  %1184 = vadd.xlane.f32.xlu1 %v1155_v39  ;;  %v4484_v39 = vld [vmem:[#allocation21_spill] sm:$0xff]  ;;  %v1378_v40 = vshll.u32 %v1377_v17, 16 }
 0x304   : > { %v1181_v63 = vpop.xlane.xlu1 %1180 }
 0x305   : > { %v1201_v53 = vadd.f32 %v1181_v63, %v1073_v34 }
 0x306   : > { %v1000_v22 = vpop.xlane.xlu0 %999 }
 0x307   : > { %1217 = vst.msk [vmem:[#allocation4 + $0x58] sm:$0xff] %vm4360_vm11, %v1201_v53  ;;  %v1030_v11 = vadd.f32 %v1000_v22, %v982_v29  ;;  %1188 = vadd.xlane.f32.xlu1 %v1157_v51  ;;  %v1265_v51 = vcvt.f32.s32 %v3453_v15  ;;  %v4499_v22 = vld [vmem:[#allocation60_spill] sm:$0xff] }
 0x308   : > { %v998_v35 = vpop.xlane.xlu1 %997  ;;  %v2355_v50 = vpop.eup %2354 }
 0x309   : > { %1047 = vst.msk [vmem:[#allocation3 + $0x8] sm:$0xff] %vm4360_vm11, %v1030_v11  ;;  %v1029_v16 = vadd.f32 %v998_v35, %v981_v56  ;;  %v992_v8 = vmul.f32 %v2355_v50, %v928_v49  ;;  %v1266_v35 = vshll.u32 %v1265_v51, 16  ;;  %v1308_v49 = vshll.u32 %v1307_v52, 16  ;;  %v4498_v51 = vld [vmem:[#allocation64_spill] sm:$0xff] }
 0x30b   : > { %1046 = vst.msk [vmem:[#allocation3] sm:$0xff] %vm4360_vm11, %v1029_v16  ;;  %v2357_v26 = vpop.eup %2356 }
 0x30c   : > { %v1004_v18 = vpop.xlane.xlu1 %1003  ;;  %v990_v10 = vmul.f32 %v2357_v26, %v926_v28 }
 0x30d   : > { %v1032_v61 = vadd.f32 %v1004_v18, %v984_v12  ;;  %v4504_v12 = vld [vmem:[#allocation83_spill] sm:$0xff] }
 0x30f   : > { %1049 = vst.msk [vmem:[#allocation3 + $0x18] sm:$0xff] %vm4360_vm11, %v1032_v61  ;;  %v1419_v61 = vcvt.f32.s32 %v3463_v44  ;;  %v4489_v44 = vld [vmem:[#allocation44_spill] sm:$0xff] }
 0x310   : > { %v1020_v6 = vpop.xlane.xlu1 %1019 }
 0x311   : > { %v1040_v46 = vadd.f32 %v1020_v6, %v992_v8 }
 0x313   : > { %1057 = vst.msk [vmem:[#allocation3 + $0x58] sm:$0xff] %vm4360_vm11, %v1040_v46 }
 0x314   : > { %v1016_v57 = vpop.xlane.xlu1 %1015 }
 0x315   : > { %v1038_v30 = vadd.f32 %v1016_v57, %v990_v10  ;;  %v1420_v10 = vshll.u32 %v1419_v61, 16  ;;  %v1391_v57 = vcvt.f32.s32 %v3468_v33 }
 0x317   : > { %1055 = vst.msk [vmem:[#allocation3 + $0x48] sm:$0xff] %vm4360_vm11, %v1038_v30 }
 0x31e   : > { %v1291_v4 = vpop.xlane.xlu0 %1290 }
 0x31f   : > { %v1292_v60 = vcvt.f32.s32 %v1291_v4  ;;  %v4490_v4 = vld [vmem:[#allocation61_spill] sm:$0xff] }
 0x321   : > { %v1295_v48 = vadd.s32 %v1294_v13, %v1292_v60  ;;  %v4491_v13 = vld [vmem:[#allocation65_spill] sm:$0xff] }
 0x322   : > { %v1403_v23 = vpop.xlane.xlu0 %1402  ;;  %v4492_v0 = vsub.f32 %v4490_v4, %v4491_v13  ;;  %v1514_v4 = vld [vmem:[#allocation5 + $0x20] sm:$0xff] }
 0x323   : > { %v1496_v34 = vadd.s32 %v1295_v48, %v4484_v39  ;;  %v1404_v54 = vcvt.f32.s32 %v1403_v23 }
 0x324   : > { %v961_v60 = vmul.f32 1.442695, %v4492_v0 }
 0x325   : > { %v1528_v3 = vsel %vm1480_vm9, %v1496_v34, %v1512_v59  ;;  %v1407_v63 = vadd.s32 %v1406_v21, %v1404_v54  ;;  %v1521_v59 = vld [vmem:[#allocation5 + $0x58] sm:$0xff]  ;;  %v1392_v21 = vshll.u32 %v1391_v57, 16  ;;  %v4493_v34 = vld [vmem:[#allocation67_spill] sm:$0xff] }
 0x326   : > { %1544 = vst.msk [vmem:[#allocation5 + $0x10] sm:$0xff] %vm4360_vm11, %v1528_v3  ;;  %v1375_v45 = vpop.xlane.xlu0 %1374  ;;  %2358 = vpow2.f32 %v961_v60  ;;  %v4494_v54 = vld [vmem:[#allocation71_spill] sm:$0xff]  ;;  %v921_v60 = vld [vmem:[#allocation3 + $0x20] sm:$0xff] }
 0x327   : > { %v1504_v53 = vadd.s32 %v1407_v63, %v4484_v39  ;;  %v1376_v29 = vcvt.f32.s32 %v1375_v45  ;;  %v4495_v25 = vsub.f32 %v4493_v34, %v4494_v54  ;;  %v1519_v45 = vld [vmem:[#allocation5 + $0x48] sm:$0xff] }
 0x329   : > { %v1536_v42 = vsel %vm1488_vm12, %v1504_v53, %v1520_v36  ;;  %v1379_v11 = vadd.s32 %v1378_v40, %v1376_v29  ;;  %vm1481_vm12 = vcmp.gt.f32.partialorder %v4489_v44, %v4473_v1  ;;  %v977_v3 = vmul.f32 1.442695, %v4495_v25 }
 0x32a   : > { %1552 = vst.msk [vmem:[#allocation5 + $0x50] sm:$0xff] %vm4360_vm11, %v1536_v42  ;;  %v940_v42 = vsub.f32 %v4499_v22, %v4498_v51  ;;  %v1515_v22 = vld [vmem:[#allocation5 + $0x28] sm:$0xff] }
 0x32b   : > { %v1502_v56 = vadd.s32 %v1379_v11, %v4484_v39  ;;  %v1263_v47 = vpop.xlane.xlu1 %1262  ;;  %2360 = vpow2.f32 %v977_v3  ;;  %v4500_v11 = vld [vmem:[#allocation73_spill] sm:$0xff] }
 0x32c   : > { %v1264_v16 = vcvt.f32.s32 %v1263_v47  ;;  %v963_v52 = vmul.f32 1.442695, %v940_v42 }
 0x32d   : > { %v1534_v50 = vsel %vm1486_vm15, %v1502_v56, %v1518_v38  ;;  %v4501_v38 = vld [vmem:[#allocation77_spill] sm:$0xff] }
 0x32e   : > { %1550 = vst.msk [vmem:[#allocation5 + $0x40] sm:$0xff] %vm4360_vm11, %v1534_v50  ;;  %v1267_v15 = vadd.s32 %v1266_v35, %v1264_v16  ;;  %v4502_v31 = vsub.f32 %v4500_v11, %v4501_v38  ;;  %v923_v35 = vld [vmem:[#allocation3 + $0x30] sm:$0xff] }
 0x32f   : > { %v1305_v18 = vpop.xlane.xlu1 %1304  ;;  %v4503_v16 = vld [vmem:[#allocation79_spill] sm:$0xff] }
 0x330   : > { %v1494_v8 = vadd.s32 %v1267_v15, %v4484_v39  ;;  %v1306_v26 = vcvt.f32.s32 %v1305_v18  ;;  %v957_v56 = vmul.f32 1.442695, %v4502_v31  ;;  %v2359_v47 = vpop.eup %2358  ;;  %v4505_v50 = vsub.f32 %v4503_v16, %v4504_v12 }
 0x332   : > { %v1526_v27 = vsel %vm1478_vm13, %v1494_v8, %v1510_v37  ;;  %v1309_v28 = vadd.s32 %v1308_v49, %v1306_v26  ;;  %2362 = vpow2.f32 %v957_v56  ;;  %v973_v15 = vmul.f32 1.442695, %v4505_v50  ;;  %v931_v49 = vld [vmem:[#allocation3 + $0x70] sm:$0xff]  ;;  %v4506_v8 = vld [vmem:[#allocation66_spill] sm:$0xff] }
 0x333   : > { %1542 = vst.msk [vmem:[#allocation5] sm:$0xff] %vm4360_vm11, %v1526_v27  ;;  %v1417_v46 = vpop.xlane.xlu1 %1416  ;;  %v987_v37 = vmul.f32 %v2359_v47, %v923_v35  ;;  %2364 = vpow2.f32 %v963_v52  ;;  %v4507_v26 = vld [vmem:[#allocation70_spill] sm:$0xff]  ;;  %v932_v47 = vld [vmem:[#allocation3 + $0x78] sm:$0xff] }
 0x334   : > { %v1497_v30 = vadd.s32 %v1309_v28, %v4484_v39  ;;  %v1418_v41 = vcvt.f32.s32 %v1417_v46  ;;  %v4508_v6 = vsub.f32 %v4506_v8, %v4507_v26  ;;  %v4509_v28 = vld [vmem:[#allocation76_spill] sm:$0xff]  ;;  %2366 = vpow2.f32 %v973_v15  ;;  %v922_v15 = vld [vmem:[#allocation3 + $0x28] sm:$0xff] }
 0x335   : > { %v2361_v43 = vpop.eup %2360  ;;  %v930_v26 = vld [vmem:[#allocation3 + $0x68] sm:$0xff] }
 0x336   : > { %v1529_v62 = vsel %vm1481_vm12, %v1497_v30, %v1513_v20  ;;  %v1421_v48 = vadd.s32 %v1420_v10, %v1418_v41  ;;  %v979_v27 = vmul.f32 1.442695, %v4508_v6  ;;  %v4510_v20 = vld [vmem:[#allocation72_spill] sm:$0xff]  ;;  %v995_v10 = vmul.f32 %v2361_v43, %v931_v49 }
 0x337   : > { %1545 = vst.msk [vmem:[#allocation5 + $0x18] sm:$0xff] %vm4360_vm11, %v1529_v62  ;;  %v1389_v23 = vpop.xlane.xlu1 %1388  ;;  %v938_v46 = vsub.f32 %v4510_v20, %v4509_v28  ;;  %v1279_v30 = vcvt.f32.s32 %v3475_v9  ;;  %v1511_v9 = vld [vmem:[#allocation5 + $0x8] sm:$0xff]  ;;  %v1349_v49 = vcvt.f32.s32 %v3486_v24  ;;  %v1321_v24 = vcvt.f32.s32 %v3497_v55 }
 0x338   : > { %v1505_v17 = vadd.s32 %v1421_v48, %v4484_v39  ;;  %v1390_v33 = vcvt.f32.s32 %v1389_v23  ;;  %2368 = vpow2.f32 %v979_v27  ;;  %v4512_v23 = vld [vmem:[#allocation82_spill] sm:$0xff] }
 0x339   : > { %v959_v44 = vmul.f32 1.442695, %v938_v46  ;;  %v1280_v62 = vshll.u32 %v1279_v30, 16  ;;  %v1350_v46 = vshll.u32 %v1349_v49, 16  ;;  %v1517_v49 = vld [vmem:[#allocation5 + $0x38] sm:$0xff] }
 0x33a   : > { %v1537_v63 = vsel %vm1489_vm14, %v1505_v17, %v1521_v59  ;;  %v1393_v36 = vadd.s32 %v1392_v21, %v1390_v33  ;;  %v4511_v59 = vld [vmem:[#allocation78_spill] sm:$0xff] }
 0x33b   : > { %1553 = vst.msk [vmem:[#allocation5 + $0x58] sm:$0xff] %vm4360_vm11, %v1537_v63  ;;  %2370 = vpow2.f32 %v959_v44  ;;  %v4513_v21 = vsub.f32 %v4511_v59, %v4512_v23  ;;  %v924_v63 = vld [vmem:[#allocation3 + $0x38] sm:$0xff]  ;;  %v1075_v23 = vld [vmem:[#allocation4 + $0x68] sm:$0xff] }
 0x33c   : > { %v1503_v40 = vadd.s32 %v1393_v36, %v4484_v39  ;;  %v2363_v13 = vpop.eup %2362  ;;  %v929_v36 = vld [vmem:[#allocation3 + $0x60] sm:$0xff] }
 0x33d   : > { %v975_v17 = vmul.f32 1.442695, %v4513_v21  ;;  %v2365_v33 = vpop.eup %2364  ;;  %v985_v25 = vmul.f32 %v2363_v13, %v921_v60  ;;  %v1516_v13 = vld [vmem:[#allocation5 + $0x30] sm:$0xff] }
 0x33e   : > { %v1535_v29 = vsel %vm1487_vm0, %v1503_v40, %v1519_v45  ;;  %v2367_v3 = vpop.eup %2366  ;;  %v988_v51 = vmul.f32 %v2365_v33, %v924_v63 }
 0x33f   : > { %1551 = vst.msk [vmem:[#allocation5 + $0x48] sm:$0xff] %vm4360_vm11, %v1535_v29  ;;  %2372 = vpow2.f32 %v975_v17  ;;  %v993_v42 = vmul.f32 %v2367_v3, %v929_v36 }
 0x342   : > { %v2369_v38 = vpop.eup %2368 }
 0x343   : > { %v996_v12 = vmul.f32 %v2369_v38, %v932_v47  ;;  %v1522_v38 = vld [vmem:[#allocation5 + $0x60] sm:$0xff]  ;;  %v1076_v47 = vld [vmem:[#allocation4 + $0x70] sm:$0xff] }
 0x345   : > { %v2371_v50 = vpop.eup %2370 }
 0x346   : > { %v986_v43 = vmul.f32 %v2371_v50, %v922_v15  ;;  %v1363_v50 = vcvt.f32.s32 %v3524_v58  ;;  %v1525_v58 = vld [vmem:[#allocation5 + $0x78] sm:$0xff] }
 0x348   : > { %v1010_v18 = vpop.xlane.xlu0 %1009  ;;  %v1364_v15 = vshll.u32 %v1363_v50, 16 }
 0x349   : > { %v1035_v61 = vadd.f32 %v1010_v18, %v987_v37  ;;  %v2373_v18 = vpop.eup %2372 }
 0x34a   : > { %v994_v28 = vmul.f32 %v2373_v18, %v930_v26  ;;  %v1335_v26 = vcvt.f32.s32 %v3541_v14 }
 0x34b   : > { %1052 = vst.msk [vmem:[#allocation3 + $0x30] sm:$0xff] %vm4360_vm11, %v1035_v61 }
 0x34c   : > { %v1026_v57 = vpop.xlane.xlu0 %1025 }
 0x34d   : > { %v1043_v41 = vadd.f32 %v1026_v57, %v995_v10  ;;  %v1461_v10 = vcvt.f32.s32 %v3492_v7  ;;  %v1524_v7 = vld [vmem:[#allocation5 + $0x70] sm:$0xff] }
 0x34f   : > { %1060 = vst.msk [vmem:[#allocation3 + $0x70] sm:$0xff] %vm4360_vm11, %v1043_v41  ;;  %v1462_v60 = vshll.u32 %v1461_v10, 16 }
 0x350   : > { %v1277_v0 = vpop.xlane.xlu0 %1276 }
 0x351   : > { %v1278_v48 = vcvt.f32.s32 %v1277_v0 }
 0x353   : > { %v1281_v54 = vadd.s32 %v1280_v62, %v1278_v48 }
 0x354   : > { %v1006_v1 = vpop.xlane.xlu0 %1005 }
 0x355   : > { %v1495_v45 = vadd.s32 %v1281_v54, %v4484_v39  ;;  %v1033_v40 = vadd.f32 %v1006_v1, %v985_v25  ;;  %v1322_v54 = vshll.u32 %v1321_v24, 16  ;;  %v1433_v25 = vcvt.f32.s32 %v3501_v19 }
 0x357   : > { %v1527_v29 = vsel %vm1479_vm1, %v1495_v45, %v1511_v9  ;;  %1050 = vst.msk [vmem:[#allocation3 + $0x20] sm:$0xff] %vm4360_vm11, %v1033_v40  ;;  %v1434_v45 = vshll.u32 %v1433_v25, 16  ;;  %v1077_v25 = vld [vmem:[#allocation4 + $0x78] sm:$0xff] }
 0x358   : > { %1543 = vst.msk [vmem:[#allocation5 + $0x8] sm:$0xff] %vm4360_vm11, %v1527_v29  ;;  %v1012_v31 = vpop.xlane.xlu1 %1011  ;;  %v1022_v56 = vpop.xlane.xlu0 %1021  ;;  %v1074_v29 = vld [vmem:[#allocation4 + $0x60] sm:$0xff] }
 0x359   : > { %v1036_v35 = vadd.f32 %v1012_v31, %v988_v51  ;;  %v1041_v52 = vadd.f32 %v1022_v56, %v993_v42 }
 0x35b   : > { %1053 = vst.msk [vmem:[#allocation3 + $0x38] sm:$0xff] %vm4360_vm11, %v1036_v35  ;;  %1058 = vst.msk [vmem:[#allocation3 + $0x60] sm:$0xff] %vm4360_vm11, %v1041_v52 }
 0x35c   : > { %v1028_v5 = vpop.xlane.xlu1 %1027 }
 0x35d   : > { %v1044_v37 = vadd.f32 %v1028_v5, %v996_v12 }
 0x35f   : > { %1061 = vst.msk [vmem:[#allocation3 + $0x78] sm:$0xff] %vm4360_vm11, %v1044_v37  ;;  %v1475_v37 = vcvt.f32.s32 %v3532_v2  ;;  %v1336_v2 = vshll.u32 %v1335_v26, 16 }
 0x360   : > { %v1008_v61 = vpop.xlane.xlu1 %1007 }
 0x361   : > { %v1034_v6 = vadd.f32 %v1008_v61, %v986_v43  ;;  %v1476_v16 = vshll.u32 %v1475_v37, 16 }
 0x363   : > { %1051 = vst.msk [vmem:[#allocation3 + $0x28] sm:$0xff] %vm4360_vm11, %v1034_v6  ;;  %v1347_v27 = vpop.xlane.xlu0 %1346 }
 0x364   : > { %v1348_v57 = vcvt.f32.s32 %v1347_v27  ;;  %v1024_v30 = vpop.xlane.xlu1 %1023 }
 0x365   : > { %v1042_v41 = vadd.f32 %v1024_v30, %v994_v28  ;;  %v1447_v30 = vcvt.f32.s32 %v3549_v32 }
 0x366   : > { %v1351_v44 = vadd.s32 %v1350_v46, %v1348_v57 }
 0x367   : > { %1059 = vst.msk [vmem:[#allocation3 + $0x68] sm:$0xff] %vm4360_vm11, %v1042_v41  ;;  %v1459_v0 = vpop.xlane.xlu0 %1458  ;;  %v1448_v24 = vshll.u32 %v1447_v30, 16 }
 0x368   : > { %v1500_v62 = vadd.s32 %v1351_v44, %v4484_v39  ;;  %v1460_v48 = vcvt.f32.s32 %v1459_v0 }
 0x36a   : > { %v1532_v21 = vsel %vm1484_vm3, %v1500_v62, %v1516_v13  ;;  %v1463_v17 = vadd.s32 %v1462_v60, %v1460_v48 }
 0x36b   : > { %1548 = vst.msk [vmem:[#allocation5 + $0x30] sm:$0xff] %vm4360_vm11, %v1532_v21  ;;  %v1319_v33 = vpop.xlane.xlu0 %1318  ;;  %v4521_v21 = vld [vmem:[#allocation74_spill] sm:$0xff] }
 0x36c   : > { %v1508_v3 = vadd.s32 %v1463_v17, %v4484_v39  ;;  %v1320_v9 = vcvt.f32.s32 %v1319_v33  ;;  %vm4522_vm13 = vcmp.gt.f32.partialorder %v4521_v21, %v4510_v20 }
 0x36e   : > { %v1540_v55 = vsel %vm1492_vm5, %v1508_v3, %v1524_v7  ;;  %v1323_v63 = vadd.s32 %v1322_v54, %v1320_v9  ;;  %v1523_v7 = vld [vmem:[#allocation5 + $0x68] sm:$0xff]  ;;  %v4523_v3 = vld [vmem:[#allocation80_spill] sm:$0xff] }
 0x36f   : > { %1556 = vst.msk [vmem:[#allocation5 + $0x70] sm:$0xff] %vm4360_vm11, %v1540_v55  ;;  %v1431_v36 = vpop.xlane.xlu0 %1430  ;;  %vm4524_vm14 = vcmp.gt.f32.partialorder %v4523_v3, %v4511_v59 }
 0x370   : > { %v1498_v40 = vadd.s32 %v1323_v63, %v4484_v39  ;;  %v1432_v53 = vcvt.f32.s32 %v1431_v36 }
 0x372   : > { %v1530_v19 = vsel %vm1482_vm7, %v1498_v40, %v1514_v4  ;;  %v1435_v42 = vadd.s32 %v1434_v45, %v1432_v53 }
 0x373   : > { %1546 = vst.msk [vmem:[#allocation5 + $0x20] sm:$0xff] %vm4360_vm11, %v1530_v19  ;;  %v1183_v34 = vpop.xlane.xlu0 %1182 }
 0x374   : > { %v1506_v31 = vadd.s32 %v1435_v42, %v4484_v39  ;;  %v1202_v56 = vadd.f32 %v1183_v34, %v1074_v29 }
 0x376   : > { %v1538_v52 = vsel %vm1490_vm6, %v1506_v31, %v1522_v38  ;;  %1218 = vst.msk [vmem:[#allocation4 + $0x60] sm:$0xff] %vm4360_vm11, %v1202_v56 }
 0x377   : > { %1554 = vst.msk [vmem:[#allocation5 + $0x60] sm:$0xff] %vm4360_vm11, %v1538_v52  ;;  %v1187_v12 = vpop.xlane.xlu0 %1186 }
 0x378   : > { %v1204_v11 = vadd.f32 %v1187_v12, %v1076_v47 }
 0x37a   : > { %1220 = vst.msk [vmem:[#allocation4 + $0x70] sm:$0xff] %vm4360_vm11, %v1204_v11 }
 0x380   : > { %v1361_v5 = vpop.xlane.xlu1 %1360 }
 0x381   : > { %v1362_v43 = vcvt.f32.s32 %v1361_v5 }
 0x383   : > { %v1365_v18 = vadd.s32 %v1364_v15, %v1362_v43 }
 0x384   : > { %v1473_v61 = vpop.xlane.xlu1 %1472 }
 0x385   : > { %v1501_v6 = vadd.s32 %v1365_v18, %v4484_v39  ;;  %v1474_v27 = vcvt.f32.s32 %v1473_v61 }
 0x387   : > { %v1533_v46 = vsel %vm1485_vm2, %v1501_v6, %v1517_v49  ;;  %v1477_v10 = vadd.s32 %v1476_v16, %v1474_v27 }
 0x388   : > { %1549 = vst.msk [vmem:[#allocation5 + $0x38] sm:$0xff] %vm4360_vm11, %v1533_v46  ;;  %v1333_v57 = vpop.xlane.xlu1 %1332 }
 0x389   : > { %v1509_v41 = vadd.s32 %v1477_v10, %v4484_v39  ;;  %v1334_v44 = vcvt.f32.s32 %v1333_v57 }
 0x38b   : > { %v1541_v14 = vsel %vm1493_vm4, %v1509_v41, %v1525_v58  ;;  %v1337_v0 = vadd.s32 %v1336_v2, %v1334_v44 }
 0x38c   : > { %1557 = vst.msk [vmem:[#allocation5 + $0x78] sm:$0xff] %vm4360_vm11, %v1541_v14  ;;  %v1445_v60 = vpop.xlane.xlu1 %1444 }
 0x38d   : > { %v1499_v62 = vadd.s32 %v1337_v0, %v4484_v39  ;;  %v1446_v48 = vcvt.f32.s32 %v1445_v60 }
 0x38f   : > { %v1531_v32 = vsel %vm4522_vm13, %v1499_v62, %v1515_v22  ;;  %v1449_v17 = vadd.s32 %v1448_v24, %v1446_v48 }
 0x390   : > { %1547 = vst.msk [vmem:[#allocation5 + $0x28] sm:$0xff] %vm4360_vm11, %v1531_v32  ;;  %v1185_v8 = vpop.xlane.xlu1 %1184 }
 0x391   : > { %v1507_v33 = vadd.s32 %v1449_v17, %v4484_v39  ;;  %v1203_v54 = vadd.f32 %v1185_v8, %v1075_v23  ;;  %1577 = sbr.rel (%p2155_p6) target bundleno = 1219 (0x4c3), region = 85 }
 0x393   : > { %v1539_v9 = vsel %vm4524_vm14, %v1507_v33, %v1523_v7  ;;  %1219 = vst.msk [vmem:[#allocation4 + $0x68] sm:$0xff] %vm4360_vm11, %v1203_v54 }
 0x394   : > { %1555 = vst.msk [vmem:[#allocation5 + $0x68] sm:$0xff] %vm4360_vm11, %v1539_v9  ;;  %v1189_v1 = vpop.xlane.xlu1 %1188 }
 0x395   : > { %v1205_v20 = vadd.f32 %v1189_v1, %v1077_v25 }
 0x397   : > { %1221 = vst.msk [vmem:[#allocation4 + $0x78] sm:$0xff] %vm4360_vm11, %v1205_v20 }
 0x398   : > { %v4525_v55 = vlaneseq  ;;  %s2156_s30 = sshll.u32 %s2536_s24, 7  ;;  %v4526_v51 = vld [vmem:[#allocation23_spill] sm:$0xff]  ;;  %v4527_v38 = vld [vmem:[#allocation22_spill] sm:$0xff]  ;;  %v4528_v34 = vld [vmem:[#allocation24_spill] sm:$0xff]  ;;  %v4532_v27 = vmov 0  ;;  %v4536_v41 = vmov 0 }
 0x399   : > { %v3704_v4 = vstv %s2156_s30  ;;  %vm1629_vm15 = vcmp.ne.s32.totalorder %v4526_v51, 0  ;;  %vm1630_vm0 = vcmp.ne.s32.totalorder %v4527_v38, 0  ;;  %vm1631_vm1 = vcmp.ne.s32.totalorder %v4528_v34, 0  ;;  %v4529_v47 = vld [vmem:[#allocation25_spill] sm:$0xff]  ;;  %v4530_v35 = vld [vmem:[#allocation26_spill] sm:$0xff]  ;;  %v4531_v11 = vld [vmem:[#allocation27_spill] sm:$0xff] }
 0x39a   : > { %v1580_v39 = vshrl.u32 %v4525_v55, 7  ;;  %vm1632_vm2 = vcmp.ne.s32.totalorder %v4529_v47, 0  ;;  %vm1633_vm3 = vcmp.ne.s32.totalorder %v4530_v35, 0  ;;  %vm1634_vm5 = vcmp.ne.s32.totalorder %v4531_v11, 0  ;;  %v1677_v37 = vld [vmem:[#allocation3] sm:$0xff]  ;;  %v1678_v61 = vld [vmem:[#allocation3 + $0x8] sm:$0xff] }
 0x39b   : > { %v1679_v28 = vld [vmem:[#allocation3 + $0x10] sm:$0xff]  ;;  %v1680_v57 = vld [vmem:[#allocation3 + $0x18] sm:$0xff]  ;;  %2374 = vlog2.f32 %v1677_v37  ;;  %v1681_v44 = vld [vmem:[#allocation3 + $0x20] sm:$0xff]  ;;  %v4542_v62 = vmov 0  ;;  %v4545_v32 = vmov 0  ;;  %v4548_v54 = vmov 0 }
 0x39c   : > { %v1581_v63 = vadd.s32 8, %v1580_v39  ;;  %v1582_v59 = vadd.s32 16, %v1580_v39  ;;  %v1583_v36 = vadd.s32 24, %v1580_v39  ;;  %v1584_v45 = vadd.s32 32, %v1580_v39  ;;  %v4538_v14 = vld [vmem:[#allocation29_spill] sm:$0xff]  ;;  %v1682_v22 = vld [vmem:[#allocation3 + $0x28] sm:$0xff] }
 0x39d   : > { %v1597_v40 = vadd.s32 %v3704_v4, %v1580_v39  ;;  %v1585_v53 = vadd.s32 40, %v1580_v39  ;;  %v1586_v19 = vadd.s32 48, %v1580_v39  ;;  %v1587_v31 = vadd.s32 56, %v1580_v39  ;;  %v4541_v24 = vld [vmem:[#allocation28_spill] sm:$0xff]  ;;  %v1683_v48 = vld [vmem:[#allocation3 + $0x30] sm:$0xff]  ;;  %v4544_v21 = vld [vmem:[#allocation30_spill] sm:$0xff] }
 0x39e   : > { %v1598_v29 = vadd.s32 %v3704_v4, %v1581_v63  ;;  %v1599_v42 = vadd.s32 %v3704_v4, %v1582_v59  ;;  %v1600_v56 = vadd.s32 %v3704_v4, %v1583_v36  ;;  %v1588_v52 = vadd.s32 64, %v1580_v39  ;;  %v1684_v17 = vld [vmem:[#allocation3 + $0x38] sm:$0xff]  ;;  %v1789_v7 = vld [vmem:[#allocation5] sm:$0xff]  ;;  %v4547_v33 = vld [vmem:[#allocation31_spill] sm:$0xff] }
 0x39f   : > { %v1601_v12 = vadd.s32 %v3704_v4, %v1584_v45  ;;  %vm1613_vm4 = vcmp.lt.s32.totalorder %v1597_v40, 200  ;;  %v1589_v50 = vadd.s32 72, %v1580_v39  ;;  %v1590_v5 = vadd.s32 80, %v1580_v39  ;;  %v1685_v25 = vld [vmem:[#allocation3 + $0x40] sm:$0xff]  ;;  %v1790_v3 = vld [vmem:[#allocation5 + $0x8] sm:$0xff]  ;;  %v4550_v1 = vld [vmem:[#allocation32_spill] sm:$0xff] }
 0x3a0   : > { %v1602_v15 = vadd.s32 %v3704_v4, %v1585_v53  ;;  %vm1614_vm6 = vcmp.lt.s32.totalorder %v1598_v29, 200  ;;  %v1591_v43 = vadd.s32 88, %v1580_v39  ;;  %v1592_v18 = vadd.s32 96, %v1580_v39  ;;  %vm3723_vm10 = vmand %vm1613_vm4, %vm1629_vm15  ;;  %v1791_v55 = vld [vmem:[#allocation5 + $0x10] sm:$0xff]  ;;  %v4558_v59 = vld [vmem:[#allocation34_spill] sm:$0xff] }
 0x3a1   : > { %v1603_v49 = vadd.s32 %v3704_v4, %v1586_v19  ;;  %vm1615_vm7 = vcmp.lt.s32.totalorder %v1599_v42, 200  ;;  %v1593_v16 = vadd.s32 104, %v1580_v39  ;;  %v1594_v26 = vadd.s32 112, %v1580_v39  ;;  %vm3731_vm12 = vmand %vm1614_vm6, %vm1630_vm0  ;;  %v1686_v45 = vld [vmem:[#allocation3 + $0x48] sm:$0xff]  ;;  %v1793_v40 = vld [vmem:[#allocation5 + $0x20] sm:$0xff] }
 0x3a2   : > { %v1604_v6 = vadd.s32 %v3704_v4, %v1587_v31  ;;  %vm1616_vm8 = vcmp.lt.s32.totalorder %v1600_v56, 200  ;;  %v4533_v27 = vsel %vm3723_vm10, 4294967295, %v4532_v27  ;;  %v1595_v46 = vadd.s32 120, %v1580_v39  ;;  %vm3740_vm14 = vmand %vm1615_vm7, %vm1631_vm1  ;;  %v4554_v39 = vld [vmem:[#allocation33_spill] sm:$0xff]  ;;  %v4563_v53 = vld [vmem:[#allocation35_spill] sm:$0xff] }
 0x3a3   : > { %v1605_v10 = vadd.s32 %v3704_v4, %v1588_v52  ;;  %vm1617_vm9 = vcmp.lt.s32.totalorder %v1601_v12, 200  ;;  %v1606_v2 = vadd.s32 %v3704_v4, %v1589_v50  ;;  %v1607_v30 = vadd.s32 %v3704_v4, %v1590_v5  ;;  %vm3749_vm4 = vmand %vm1616_vm8, %vm1632_vm2  ;;  %v1662_v19 = vld [vmem:[#allocation2 + $0x8] sm:$0xff]  ;;  %v1795_v31 = vld [vmem:[#allocation5 + $0x30] sm:$0xff] }
 0x3a4   : > { %vm1618_vm13 = vcmp.lt.s32.totalorder %v1602_v15, 200  ;;  %v4537_v41 = vsel %vm3740_vm14, 4294967295, %v4536_v41  ;;  %2376 = vlog2.f32 %v1678_v61  ;;  %v1608_v13 = vadd.s32 %v3704_v4, %v1591_v43  ;;  %vm3758_vm7 = vmand %vm1617_vm9, %vm1633_vm3  ;;  %v1794_v42 = vld [vmem:[#allocation5 + $0x28] sm:$0xff]  ;;  %v4568_v52 = vld [vmem:[#allocation36_spill] sm:$0xff] }
 0x3a5   : > { %vm1619_vm15 = vcmp.lt.s32.totalorder %v1603_v49, 200  ;;  %vm1635_vm0 = vcmp.ne.s32.totalorder %v4538_v14, 0  ;;  %2378 = vlog2.f32 %v1679_v28  ;;  %v1609_v60 = vadd.s32 %v3704_v4, %v1592_v18  ;;  %vm3767_vm11 = vmand %vm1618_vm13, %vm1634_vm5  ;;  %v2375_v56 = vpop.eup %2374  ;;  %v3824_v50 = vld [vmem:[#allocation5 + $0x38] sm:$0xff]  ;;  %v3826_v5 = vld [vmem:[#allocation5 + $0x40] sm:$0xff] }
 0x3a6   : > { %vm1620_vm1 = vcmp.lt.s32.totalorder %v1604_v6, 200  ;;  %vm1636_vm6 = vcmp.ne.s32.totalorder %v4541_v24, 0  ;;  %v4543_v62 = vsel %vm3758_vm7, 4294967295, %v4542_v62  ;;  %2380 = vlog2.f32 %v1680_v57  ;;  %vm3776_vm2 = vmand %vm1619_vm15, %vm1635_vm0  ;;  %v4576_v43 = vld [vmem:[#allocation37_spill] sm:$0xff]  ;;  %v1663_v49 = vld [vmem:[#allocation2 + $0x10] sm:$0xff] }
 0x3a7   : > { %v1610_v23 = vadd.s32 %v3704_v4, %v1593_v16  ;;  %vm1637_vm8 = vcmp.ne.s32.totalorder %v4544_v21, 0  ;;  %v4546_v32 = vsel %vm3767_vm11, 4294967295, %v4545_v32  ;;  %2382 = vlog2.f32 %v1681_v44  ;;  %vm3785_vm3 = vmand %vm1620_vm1, %vm1636_vm6  ;;  %v3845_v61 = vld [vmem:[#allocation5 + $0x48] sm:$0xff]  ;;  %v1664_v44 = vld [vmem:[#allocation2 + $0x18] sm:$0xff] }
 0x3a8   : > { %v1611_v8 = vadd.s32 %v3704_v4, %v1594_v26  ;;  %v4549_v54 = vsel %vm3776_vm2, 4294967295, %v4548_v54  ;;  %2384 = vlog2.f32 %v1682_v22  ;;  %v1612_v9 = vadd.s32 %v3704_v4, %v1595_v46  ;;  %v1792_v4 = vld [vmem:[#allocation5 + $0x18] sm:$0xff]  ;;  %v3886_v22 = vld [vmem:[#allocation5 + $0x68] sm:$0xff] }
 0x3a9   : > { %v4551_v20 = vmov 0  ;;  %2386 = vlog2.f32 %v1683_v48  ;;  %vm4555_vm9 = vcmp.lt.s32.totalorder %v1605_v10, 200  ;;  %v4556_v63 = vmov 0  ;;  %v3865_v46 = vld [vmem:[#allocation5 + $0x58] sm:$0xff]  ;;  %v3867_v10 = vld [vmem:[#allocation5 + $0x60] sm:$0xff]  ;;  %v1690_v58 = vld [vmem:[#allocation3 + $0x68] sm:$0xff] }
 0x3aa   : > { %v4552_v20 = vsel %vm3785_vm3, 4294967295, %v4551_v20  ;;  %vm3793_vm2 = vmand %vm4555_vm9, %vm1637_vm8  ;;  %2388 = vlog2.f32 %v1684_v17  ;;  %vm4559_vm13 = vcmp.ne.s32.totalorder %v4547_v33, 0  ;;  %vm4560_vm3 = vcmp.lt.s32.totalorder %v1606_v2, 200 }
 0x3ab   : > { %4553 = vst [vmem:[#allocation87_spill] sm:$0xff] %v4552_v20  ;;  %v4557_v63 = vsel %vm3793_vm2, 4294967295, %v4556_v63  ;;  %vm3802_vm15 = vmand %vm4560_vm3, %vm4559_vm13  ;;  %v4561_v36 = vmov 0  ;;  %2390 = vlog2.f32 %v1685_v25  ;;  %vm4564_vm5 = vcmp.ne.s32.totalorder %v4550_v1, 0  ;;  %v3907_v25 = vld [vmem:[#allocation5 + $0x70] sm:$0xff] }
 0x3ac   : > { %v4562_v36 = vsel %vm3802_vm15, 4294967295, %v4561_v36  ;;  %vm4565_vm1 = vcmp.lt.s32.totalorder %v1607_v30, 200  ;;  %v4566_v29 = vmov 0  ;;  %vm4569_vm9 = vcmp.ne.s32.totalorder %v4554_v39, 0  ;;  %v1661_v30 = vld [vmem:[#allocation2] sm:$0xff] }
 0x3ad   : > { %vm3811_vm2 = vmand %vm4565_vm1, %vm4564_vm5  ;;  %vm4570_vm8 = vcmp.lt.s32.totalorder %v1608_v13, 200  ;;  %v4571_v12 = vmov 0  ;;  %vm4573_vm1 = vcmp.eq.s32.totalorder %v1789_v7, %v4526_v51  ;;  %vm4578_vm3 = vcmp.lt.s32.totalorder %v1609_v60, 200  ;;  %v3847_v51 = vld [vmem:[#allocation5 + $0x50] sm:$0xff] }
 0x3ae   : > { %v4567_v29 = vsel %vm3811_vm2, 4294967295, %v4566_v29  ;;  %vm3820_vm0 = vmand %vm4570_vm8, %vm4569_vm9  ;;  %v2377_v37 = vpop.eup %2376  ;;  %vm4577_vm9 = vcmp.ne.s32.totalorder %v4558_v59, 0  ;;  %v4579_v18 = vmov 0  ;;  %2392 = vlog2.f32 %v1686_v45  ;;  %v1687_v45 = vld [vmem:[#allocation3 + $0x50] sm:$0xff] }
 0x3af   : > { %v4572_v12 = vsel %vm3820_vm0, 4294967295, %v4571_v12  ;;  %vm3833_vm13 = vmand %vm4573_vm1, %vm3723_vm10  ;;  %vm4581_vm6 = vcmp.eq.s32.totalorder %v1790_v3, %v4527_v38  ;;  %v2379_v26 = vpop.eup %2378  ;;  %v4586_v6 = vmov 0  ;;  %v1696_v28 = vmul.f32 0.6931472, %v2377_v37  ;;  %v3909_v3 = vld [vmem:[#allocation5 + $0x78] sm:$0xff] }
 0x3b0   : > { %vm3841_vm0 = vmand %vm4578_vm3, %vm4577_vm9  ;;  %vm4584_vm3 = vcmp.ne.s32.totalorder %v4563_v53, 0  ;;  %vm4585_vm9 = vcmp.lt.s32.totalorder %v1610_v23, 200  ;;  %vm4588_vm10 = vcmp.eq.s32.totalorder %v1791_v55, %v4528_v34  ;;  %v2381_v57 = vpop.eup %2380  ;;  %v4593_v2 = vmov 0  ;;  %v1665_v23 = vld [vmem:[#allocation2 + $0x20] sm:$0xff]  ;;  %v1668_v38 = vld [vmem:[#allocation2 + $0x38] sm:$0xff] }
 0x3b1   : > { %v4580_v18 = vsel %vm3841_vm0, 4294967295, %v4579_v18  ;;  %vm3854_vm8 = vmand %vm4581_vm6, %vm3731_vm12  ;;  %v1698_v13 = vmul.f32 0.6931472, %v2379_v26  ;;  %vm4595_vm1 = vcmp.eq.s32.totalorder %v1792_v4, %v4529_v47  ;;  %v2383_v60 = vpop.eup %2382  ;;  %v4600_v48 = vmov 0  ;;  %v1742_v4 = vld [vmem:[#allocation4 + $0x8] sm:$0xff] }
 0x3b2   : > { %vm3861_vm5 = vmand %vm4585_vm9, %vm4584_vm3  ;;  %vm4591_vm3 = vcmp.ne.s32.totalorder %v4568_v52, 0  ;;  %vm4592_vm9 = vcmp.lt.s32.totalorder %v1611_v8, 200  ;;  %v1694_v17 = vmul.f32 0.6931472, %v2375_v56  ;;  %v1700_v7 = vmul.f32 0.6931472, %v2381_v57 }
 0x3b3   : > { %v4587_v6 = vsel %vm3861_vm5, 4294967295, %v4586_v6  ;;  %vm3875_vm0 = vmand %vm4588_vm10, %vm3740_vm14  ;;  %v1726_v8 = vadd.f32 %v1696_v28, %v1662_v19  ;;  %vm4602_vm10 = vcmp.eq.s32.totalorder %v1793_v40, %v4530_v35  ;;  %v1702_v55 = vmul.f32 0.6931472, %v2383_v60  ;;  %v1666_v19 = vld [vmem:[#allocation2 + $0x28] sm:$0xff]  ;;  %v1688_v28 = vld [vmem:[#allocation3 + $0x58] sm:$0xff] }
 0x3b4   : > { %vm3882_vm5 = vmand %vm4592_vm9, %vm4591_vm3  ;;  %vm4598_vm3 = vcmp.ne.s32.totalorder %v4576_v43, 0  ;;  %vm4599_vm9 = vcmp.lt.s32.totalorder %v1612_v9, 200  ;;  %v2385_v9 = vpop.eup %2384  ;;  %v1727_v37 = vadd.f32 %v1698_v13, %v1663_v49  ;;  %v1728_v49 = vadd.f32 %v1700_v7, %v1664_v44  ;;  %v1743_v13 = vld [vmem:[#allocation4 + $0x10] sm:$0xff]  ;;  %v1744_v7 = vld [vmem:[#allocation4 + $0x18] sm:$0xff] }
 0x3b5   : > { %v4594_v2 = vsel %vm3882_vm5, 4294967295, %v4593_v2  ;;  %vm3896_vm14 = vmand %vm4595_vm1, %vm3749_vm4  ;;  %v2387_v40 = vpop.eup %2386  ;;  %v1704_v56 = vmul.f32 0.6931472, %v2385_v9  ;;  %vm4609_vm1 = vcmp.eq.s32.totalorder %v1795_v31, %v4538_v14  ;;  %v1689_v31 = vld [vmem:[#allocation3 + $0x60] sm:$0xff]  ;;  %v1667_v9 = vld [vmem:[#allocation2 + $0x30] sm:$0xff]  ;;  %v3961_v44 = vadd.f32 %v1694_v17, %v1661_v30 }
 0x3b6   : > { %vm3903_vm5 = vmand %vm4599_vm9, %vm4598_vm3  ;;  %vm4608_vm9 = vnez %v4549_v54  ;;  %v2389_v57 = vpop.eup %2388  ;;  %v1706_v60 = vmul.f32 0.6931472, %v2387_v40  ;;  %v1758_v40 = vsub.f32 %v1726_v8, %v1742_v4  ;;  %vm4617_vm3 = vcmp.eq.s32.totalorder %v3826_v5, %v4544_v21  ;;  %v3977_v30 = vld [vmem:[#allocation4] sm:$0xff] }
 0x3b7   : > { %v4601_v48 = vsel %vm3903_vm5, 4294967295, %v4600_v48  ;;  %vm3917_vm6 = vmand %vm4602_vm10, %vm3758_vm7  ;;  %vm4605_vm5 = vcmp.eq.s32.totalorder %v1794_v42, %v4531_v11  ;;  %v4373_v11 = vmov 0   ;;  %v2391_v15 = vpop.eup %2390  ;;  %2394 = vlog2.f32 %v1687_v45  ;;  %v3994_v8 = vld [vmem:[#allocation4 + $0x20] sm:$0xff] }
 0x3b8   : > { %vm3931_vm10 = vmand %vm4605_vm5, %vm3767_vm11  ;;  %v1879_v42 = vsel %vm3833_vm13, 1, %v4373_v11  ;;  %vm4616_vm13 = vnez %v4557_v63  ;;  %2396 = vlog2.f32 %v1688_v28  ;;  %v3992_v17 = vadd.f32 %v1704_v56, %v1666_v19  ;;  %v4007_v19 = vld [vmem:[#allocation4 + $0x28] sm:$0xff] }
 0x3b9   : > { %vm3941_vm7 = vmand %vm4609_vm1, %vm4608_vm9  ;;  %vm4612_vm1 = vnez %v4552_v20  ;;  %vm4613_vm9 = vcmp.eq.s32.totalorder %v3824_v50, %v4541_v24  ;;  %v4620_v24 = vmov 0   ;;  %v3975_v20 = vadd.f32 %v1702_v55, %v1665_v23 }
 0x3ba   : > { %vm3957_vm11 = vmand %vm4613_vm9, %vm4612_vm1  ;;  %v1880_v50 = vsel %vm3854_vm8, 1, %v4620_v24  ;;  %vm4621_vm9 = vcmp.eq.s32.totalorder %v3845_v61, %v4547_v33  ;;  %v1881_v5 = vsel %vm3875_vm0, 1, %v4620_v24  ;;  %v1708_v23 = vmul.f32 0.6931472, %v2389_v57  ;;  %v2393_v61 = vpop.eup %2392 }
 0x3bb   : > { %vm3968_vm5 = vmand %vm4617_vm3, %vm4616_vm13  ;;  %vm4624_vm3 = vcmask 7168   ;;  %v1759_v55 = vsub.f32 %v1727_v37, %v1743_v13  ;;  %vm4625_vm8 = vcmp.eq.s32.totalorder %v3847_v51, %v4550_v1  ;;  %2398 = vlog2.f32 %v1689_v31  ;;  %v1669_v37 = vld [vmem:[#allocation2 + $0x40] sm:$0xff] }
 0x3bc   : > { %vm3984_vm1 = vmand %vm4621_vm9, %vm3802_vm15  ;;  %v1895_v16 = vsel %vm4624_vm3, %v1879_v42, 0  ;;  %v1710_v4 = vmul.f32 0.6931472, %v2391_v15  ;;  %v4005_v45 = vadd.f32 %v1706_v60, %v1667_v9  ;;  %v1760_v56 = vsub.f32 %v1728_v49, %v1744_v7  ;;  %v4019_v42 = vld [vmem:[#allocation4 + $0x30] sm:$0xff] }
 0x3bd   : > { %vm4001_vm9 = vmand %vm4625_vm8, %vm3811_vm2  ;;  %vm4628_vm0 = vnez %v4572_v12  ;;  %vm4629_vm3 = vcmp.eq.s32.totalorder %v3865_v46, %v4554_v39  ;;  %v4630_v1 = vmov 0  ;;  %vm4632_vm8 = vcmask 7168  }
 0x3be   : > { %vm4014_vm15 = vmand %vm4629_vm3, %vm4628_vm0  ;;  %v1896_v51 = vsel %vm4632_vm8, %v1880_v50, 0  ;;  %v1757_v28 = vsub.f32 %v3961_v44, %v3977_v30  ;;  %v1774_v57 = vsel %vm3731_vm12, %v1758_v40, 0.0  ;;  %vm4633_vm2 = vnez %v4580_v18 }
 0x3bf   : > { %v4631_v1 = vsel %vm4014_vm15, 4294967295, %v4630_v1  ;;  %vm4634_vm13 = vcmp.eq.s32.totalorder %v3867_v10, %v4558_v59  ;;  %v1882_v46 = vsel %vm3896_vm14, 1, %v4620_v24  ;;  %v1897_v60 = vsel %vm4632_vm8, %v1881_v5, 0 }
 0x3c0   : > { %vm4030_vm3 = vmand %vm4634_vm13, %vm4633_vm2  ;;  %v1761_v49 = vsub.f32 %v3975_v20, %v3994_v8  ;;  %vm4637_vm12 = vnez %v4587_v6  ;;  %vm4638_vm0 = vcmp.eq.s32.totalorder %v3886_v22, %v4563_v53  ;;  %v1883_v59 = vsel %vm3917_vm6, 1, %v4620_v24 }
 0x3c1   : > { %vm4045_vm15 = vmand %vm4638_vm0, %vm4637_vm12  ;;  %v1884_v10 = vsel %vm3931_vm10, 1, %v4620_v24  ;;  %v1885_v20 = vsel %vm3941_vm7, 1, %v4620_v24  ;;  %v1712_v34 = vmul.f32 0.6931472, %v2393_v61  ;;  %v4058_v13 = vadd.f32 %v1708_v23, %v1668_v38  ;;  %v2395_v15 = vpop.eup %2394 }
 0x3c2   : > { %v1762_v53 = vsub.f32 %v3992_v17, %v4007_v19  ;;  %vm4641_vm14 = vnez %v4537_v41  ;;  %vm4642_vm13 = vnez %v4594_v2  ;;  %vm4643_vm6 = vcmp.eq.s32.totalorder %v3907_v25, %v4568_v52  ;;  %v2397_v50 = vpop.eup %2396 }
 0x3c3   : > { %v1775_v22 = vsel %vm4641_vm14, %v1759_v55, 0.0  ;;  %vm1835_vm0 = vmand %vm4643_vm6, %vm4642_vm13  ;;  %v4069_v47 = vadd.f32 %v1710_v4, %v1669_v37  ;;  %v1763_v35 = vsub.f32 %v4005_v45, %v4019_v42  ;;  %v1776_v26 = vsel %vm3749_vm4, %v1760_v56, 0.0  ;;  %v1670_v56 = vld [vmem:[#allocation2 + $0x48] sm:$0xff] }
 0x3c4   : > { %vm4644_vm7 = vnez %v4601_v48  ;;  %vm4645_vm10 = vcmp.eq.s32.totalorder %v3909_v3, %v4576_v43  ;;  %vm4646_vm14 = vcmask 7168   ;;  %v1886_v52 = vsel %vm3957_vm11, 1, %v4620_v24 }
 0x3c5   : > { %vm1836_vm8 = vmand %vm4645_vm10, %vm4644_vm7  ;;  %v1838_v41 = vsel %vm4646_vm14, %v1774_v57, 0.0  ;;  %v1887_v25 = vsel %vm3968_vm5, 1, %v4620_v24  ;;  %v1888_v0 = vsel %vm3984_vm1, 1, %v4620_v24  ;;  %v1889_v31 = vsel %vm4001_vm9, 1, %v4620_v24  ;;  %v2399_v17 = vpop.eup %2398 }
 0x3c6   : > { %vm4647_vm4 = vnez %v4631_v1  ;;  %v1891_v3 = vsel %vm4030_vm3, 1, %v4620_v24  ;;  %v1892_v11 = vsel %vm4045_vm15, 1, %v4620_v24  ;;  %v1893_v14 = vsel %vm1835_vm0, 1, %v4620_v24  ;;  %vm4648_vm11 = vmmov %vm4646_vm14 }
 0x3c7   : > { %v1890_v43 = vsel %vm4647_vm4, 1, %v4620_v24  ;;  %v1894_v9 = vsel %vm1836_vm8, 1, %v4620_v24  ;;  %v1898_v44 = vsel %vm4648_vm11, %v1882_v46, 0  ;;  %vm4649_vm5 = vmmov %vm4648_vm11  ;;  %2400 = vlog2.f32 %v1690_v58 }
 0x3c8   : > { %v1899_v7 = vsel %vm4649_vm5, %v1883_v59, 0  ;;  %vm4650_vm1 = vmmov %vm4649_vm5  ;;  %v1748_v59 = vld [vmem:[#allocation4 + $0x38] sm:$0xff]  ;;  %vm4661_vm5 = vnez %v4543_v62 }
 0x3c9   : > { %v1901_v40 = vsel %vm4650_vm1, %v1884_v10, 0  ;;  %v1900_v30 = vadd.s32 %v1899_v7, %v1895_v16  ;;  %vm4651_vm9 = vmmov %vm4650_vm1  ;;  %v1777_v10 = vsel %vm4661_vm5, %v1761_v49, 0.0  ;;  %v1764_v62 = vsub.f32 %v4058_v13, %v1748_v59  ;;  %v1675_v59 = vld [vmem:[#allocation2 + $0x70] sm:$0xff] }
 0x3ca   : > { %v1902_v21 = vadd.s32 %v1901_v40, %v1896_v51  ;;  %v1903_v5 = vsel %vm4651_vm9, %v1885_v20, 0  ;;  %vm4652_vm3 = vmmov %vm4650_vm1  ;;  %v1714_v40 = vmul.f32 0.6931472, %v2395_v15 }
 0x3cb   : > { %v1905_v23 = vsel %vm4652_vm3, %v1886_v52, 0  ;;  %v1904_v8 = vadd.s32 %v1903_v5, %v1897_v60  ;;  %vm4653_vm15 = vmmov %vm4650_vm1 }
 0x3cc   : > { %v1906_v55 = vadd.s32 %v1905_v23, %v1898_v44  ;;  %v1907_v33 = vsel %vm4653_vm15, %v1887_v25, 0  ;;  %vm4654_vm6 = vmmov %vm4650_vm1  ;;  %v1749_v44 = vld [vmem:[#allocation4 + $0x40] sm:$0xff]  ;;  %vm4665_vm15 = vnez %v4546_v32 }
 0x3cd   : > { %v1909_v24 = vsel %vm4654_vm6, %v1888_v0, 0  ;;  %v1908_v61 = vadd.s32 %v1907_v33, %v1900_v30  ;;  %vm4655_vm0 = vmmov %vm4650_vm1  ;;  %vm4662_vm1 = vnez %v4533_v27  ;;  %v1691_v0 = vld [vmem:[#allocation3 + $0x70] sm:$0xff]  ;;  %v1778_v49 = vsel %vm4665_vm15, %v1762_v53, 0.0  ;;  %v1672_v53 = vld [vmem:[#allocation2 + $0x58] sm:$0xff] }
 0x3ce   : > { %v1910_v38 = vadd.s32 %v1909_v24, %v1902_v21  ;;  %v1911_v4 = vsel %vm4655_vm0, %v1889_v31, 0  ;;  %vm4656_vm10 = vmmov %vm4655_vm0  ;;  %v1773_v25 = vsel %vm4662_vm1, %v1757_v28, 0.0  ;;  %v1734_v31 = vadd.f32 %v1712_v34, %v1670_v56  ;;  %v1671_v28 = vld [vmem:[#allocation2 + $0x50] sm:$0xff]  ;;  %v1750_v34 = vld [vmem:[#allocation4 + $0x48] sm:$0xff] }
 0x3cf   : > { %v1913_v19 = vsel %vm4656_vm10, %v1890_v43, 0  ;;  %v1912_v16 = vadd.s32 %v1911_v4, %v1904_v8  ;;  %vm4657_vm8 = vmmov %vm4655_vm0  ;;  %2402 = vlog2.f32 %v1691_v0  ;;  %v1716_v21 = vmul.f32 0.6931472, %v2397_v50  ;;  %v1673_v33 = vld [vmem:[#allocation2 + $0x60] sm:$0xff]  ;;  %v1751_v24 = vld [vmem:[#allocation4 + $0x50] sm:$0xff] }
 0x3d0   : > { %v1914_v1 = vadd.s32 %v1913_v19, %v1906_v55  ;;  %v1915_v51 = vsel %vm4657_vm8, %v1891_v3, 0  ;;  %vm4658_vm14 = vmmov %vm4655_vm0  ;;  %v1765_v5 = vsub.f32 %v4069_v47, %v1749_v44  ;;  %v1735_v8 = vadd.f32 %v1714_v40, %v1671_v28  ;;  %v4670_v47 = vld [vmem:[#allocation87_spill] sm:$0xff]  ;;  %v1754_v0 = vld [vmem:[#allocation4 + $0x68] sm:$0xff] }
 0x3d1   : > { %v1917_v37 = vsel %vm4658_vm14, %v1892_v11, 0  ;;  %v1916_v57 = vadd.s32 %v1915_v51, %v1908_v61  ;;  %vm4659_vm4 = vmmov %vm4655_vm0  ;;  %v1766_v55 = vsub.f32 %v1734_v31, %v1750_v34  ;;  %vm4671_vm14 = vnez %v4670_v47  ;;  %v1753_v51 = vld [vmem:[#allocation4 + $0x60] sm:$0xff] }
 0x3d2   : > { %v1918_v39 = vadd.s32 %v1917_v37, %v1910_v38  ;;  %v1919_v46 = vsel %vm4659_vm4, %v1893_v14, 0  ;;  %vm4660_vm11 = vmmov %vm4655_vm0  ;;  %v1692_v14 = vld [vmem:[#allocation3 + $0x78] sm:$0xff]  ;;  %v1780_v61 = vsel %vm4671_vm14, %v1764_v62, 0.0  ;;  %vm4672_vm4 = vnez %v4557_v63  ;;  %v2401_v37 = vpop.eup %2400 }
 0x3d3   : > { %v1921_v60 = vsel %vm4660_vm11, %v1894_v9, 0  ;;  %v1920_v20 = vadd.s32 %v1919_v46, %v1912_v16  ;;  %vm4663_vm9 = vmmov %vm4655_vm0  ;;  %2404 = vlog2.f32 %v1692_v14  ;;  %v1752_v38 = vld [vmem:[#allocation4 + $0x58] sm:$0xff]  ;;  %v1767_v16 = vsub.f32 %v1735_v8, %v1751_v24  ;;  %v1674_v46 = vld [vmem:[#allocation2 + $0x68] sm:$0xff] }
 0x3d4   : > { %v1922_v52 = vadd.s32 %v1921_v60, %v1914_v1  ;;  %v1840_v43 = vsel %vm4663_vm9, %v1775_v22, 0.0  ;;  %v1923_v3 = vadd.s32 %v1918_v39, %v1916_v57  ;;  %vm4664_vm3 = vmmov %vm4655_vm0  ;;  %vm4675_vm1 = vnez %v4562_v36  ;;  %v1755_v14 = vld [vmem:[#allocation4 + $0x70] sm:$0xff] }
 0x3d5   : > { %v1837_v11 = vsel %vm4664_vm3, %v1773_v25, 0.0  ;;  %vm4666_vm6 = vmmov %vm4655_vm0  ;;  %vm4667_vm0 = vnez %v4549_v54  ;;  %v1736_v54 = vadd.f32 %v1716_v21, %v1672_v53  ;;  %v1782_v57 = vsel %vm4675_vm1, %v1766_v55, 0.0 }
 0x3d6   : > { %v1924_v9 = vadd.s32 %v1922_v52, %v1920_v20  ;;  %v1839_v7 = vadd.f32 %v1838_v41, %v1837_v11  ;;  %v1842_v27 = vsel %vm4666_vm6, %v1776_v26, 0.0  ;;  %v1779_v13 = vsel %vm4667_vm0, %v1763_v35, 0.0  ;;  %vm4668_vm10 = vmmov %vm4664_vm3  ;;  %v1676_v52 = vld [vmem:[#allocation2 + $0x78] sm:$0xff] }
 0x3d7   : > { %v1844_v32 = vsel %vm4668_vm10, %v1777_v10, 0.0  ;;  %v1718_v41 = vmul.f32 0.6931472, %v2399_v17  ;;  %vm4669_vm8 = vmmov %vm4664_vm3  ;;  %v1781_v35 = vsel %vm4672_vm4, %v1765_v5, 0.0  ;;  %v1768_v60 = vsub.f32 %v1736_v54, %v1752_v38 }
 0x3d8   : > { %v1925_v22 = vadd.s32 %v1924_v9, %v1923_v3  ;;  %v1841_v30 = vadd.f32 %v1840_v43, %v1839_v7  ;;  %v1846_v50 = vsel %vm4669_vm8, %v1778_v49, 0.0  ;;  %vm4673_vm11 = vmmov %vm4664_vm3  ;;  %v1720_v10 = vmul.f32 0.6931472, %v2401_v37  ;;  %v1756_v49 = vld [vmem:[#allocation4 + $0x78] sm:$0xff] }
 0x3d9   : > { %v1848_v17 = vsel %vm4673_vm11, %v1779_v13, 0.0  ;;  %v1737_v56 = vadd.f32 %v1718_v41, %v1673_v33  ;;  %vm4674_vm5 = vmmov %vm4664_vm3  ;;  %v2403_v63 = vpop.eup %2402  ;;  %vm4679_vm6 = vnez %v4572_v12 }
 0x3da   : > { %v1927_v26 = vshrl.u32 %v1925_v22, 16  ;;  %v1843_v15 = vadd.f32 %v1842_v27, %v1841_v30  ;;  %v1926_v23 = vand.u32 65535, %v1925_v22  ;;  %v1850_v1 = vsel %vm4674_vm5, %v1780_v61, 0.0  ;;  %vm4676_vm9 = vmmov %vm4664_vm3 }
 0x3db   : > { %v1852_v58 = vsel %vm4676_vm9, %v1781_v35, 0.0  ;;  %v1722_v25 = vmul.f32 0.6931472, %v2403_v63  ;;  %v1769_v31 = vsub.f32 %v1737_v56, %v1753_v51  ;;  %vm4677_vm3 = vnez %v4567_v29  ;;  %vm4678_vm15 = vmmov %vm4674_vm5 }
 0x3dc   : > { %v1929_v45 = vcvt.s32.f32 %v1927_v26  ;;  %v1845_v42 = vadd.f32 %v1844_v32, %v1843_v15  ;;  %v1928_v19 = vcvt.s32.f32 %v1926_v23  ;;  %v1783_v43 = vsel %vm4677_vm3, %v1767_v16, 0.0  ;;  %vm4680_vm0 = vmmov %vm4674_vm5 }
 0x3dd   : > { %v2405_v20 = vpop.eup %2404  ;;  %v1738_v11 = vadd.f32 %v1720_v10, %v1674_v46  ;;  %v1854_v44 = vsel %vm4678_vm15, %v1782_v57, 0.0  ;;  %v1739_v9 = vadd.f32 %v1722_v25, %v1675_v59  ;;  %v1784_v7 = vsel %vm4679_vm6, %v1768_v60, 0.0  ;;  %vm4681_vm10 = vmmov %vm4680_vm0 }
 0x3de   : > { %1932 = vadd.xlane.f32.xlu0 %v1929_v45  ;;  %v1847_v4 = vadd.f32 %v1846_v50, %v1845_v42  ;;  %v1724_v36 = vmul.f32 0.6931472, %v2405_v20  ;;  %v1856_v28 = vsel %vm4680_vm0, %v1783_v43, 0.0  ;;  %v1785_v29 = vsel %vm4633_vm2, %v1769_v31, 0.0  ;;  %vm4682_vm8 = vmmov %vm4680_vm0 }
 0x3df   : > { %v1770_v27 = vsub.f32 %v1738_v11, %v1754_v0  ;;  %v1771_v34 = vsub.f32 %v1739_v9, %v1755_v14  ;;  %v1858_v30 = vsel %vm4681_vm10, %v1784_v7, 0.0  ;;  %v1860_v12 = vsel %vm4682_vm8, %v1785_v29, 0.0  ;;  %vm4683_vm14 = vmmov %vm4680_vm0 }
 0x3e0   : > { %v1849_v39 = vadd.f32 %v1848_v17, %v1847_v4  ;;  %v1740_v62 = vadd.f32 %v1724_v36, %v1676_v52  ;;  %vm4684_vm2 = vmmov %vm4680_vm0 }
 0x3e1   : > { %v1786_v5 = vsel %vm4637_vm12, %v1770_v27, 0.0  ;;  %v1787_v32 = vsel %vm4642_vm13, %v1771_v34, 0.0  ;;  %vm4685_vm4 = vmmov %vm4680_vm0 }
 0x3e2   : > { %1930 = vadd.xlane.f32.xlu0 %v1928_v19  ;;  %v1851_v3 = vadd.f32 %v1850_v1, %v1849_v39  ;;  %v1772_v21 = vsub.f32 %v1740_v62, %v1756_v49  ;;  %v1862_v41 = vsel %vm4683_vm14, %v1786_v5, 0.0  ;;  %v1864_v15 = vsel %vm4684_vm2, %v1787_v32, 0.0 }
 0x3e4   : > { %v1853_v40 = vadd.f32 %v1852_v58, %v1851_v3  ;;  %v1788_v18 = vsel %vm4644_vm7, %v1772_v21, 0.0 }
 0x3e5   : > { %v1866_v8 = vsel %vm4685_vm4, %v1788_v18, 0.0 }
 0x3e6   : > { %v1855_v22 = vadd.f32 %v1854_v44, %v1853_v40 }
 0x3e8   : > { %v1857_v13 = vadd.f32 %v1856_v28, %v1855_v22 }
 0x3ea   : > { %v1859_v53 = vadd.f32 %v1858_v30, %v1857_v13 }
 0x3ec   : > { %v1861_v26 = vadd.f32 %v1860_v12, %v1859_v53 }
 0x3ee   : > { %v1863_v23 = vadd.f32 %v1862_v41, %v1861_v26 }
 0x3f0   : > { %v1865_v6 = vadd.f32 %v1864_v15, %v1863_v23 }
 0x3f2   : > { %v1867_v55 = vadd.f32 %v1866_v8, %v1865_v6 }
 0x3f4   : > { %1868 = vadd.xlane.f32.xlu1 %v1867_v55 }
 0x46b   : > { %v1933_v50 = vpop.xlane.xlu0 %1932 }
 0x46c   : > { %v1935_v33 = vcvt.f32.s32 %v1933_v50 }
 0x46e   : > { %v1936_v2 = vshll.u32 %v1935_v33, 16 }
 0x46f   : > { %v1931_v24 = vpop.xlane.xlu0 %1930 }
 0x470   : > { %v1934_v47 = vcvt.f32.s32 %v1931_v24 }
 0x472   : > { %v1937_v61 = vadd.s32 %v1936_v2, %v1934_v47 }
 0x474   : > { %v1938_v45 = vrot.slane %v1937_v61, 4 }
 0x476   : > { %v1939_v42 = vadd.s32 %v1938_v45, %v1937_v61 }
 0x478   : > { %v1940_v48 = vrot.slane %v1939_v42, 2 }
 0x47a   : > { %v1941_v38 = vadd.s32 %v1940_v48, %v1939_v42 }
 0x47c   : > { %v1942_v56 = vrot.slane %v1941_v38, 1 }
 0x47e   : > { %v1943_v51 = vadd.s32 %v1942_v56, %v1941_v38 }
 0x481   : > { %v1869_v54 = vpop.xlane.xlu1 %1868 }
 0x482   : > { %v1870_v35 = vrot.slane %v1869_v54, 4 }
 0x484   : > { %v1871_v17 = vadd.f32 %v1870_v35, %v1869_v54 }
 0x486   : > { %v1872_v4 = vrot.slane %v1871_v17, 2 }
 0x488   : > { %v1873_v19 = vadd.f32 %v1872_v4, %v1871_v17 }
 0x48a   : > { %v1874_v16 = vrot.slane %v1873_v19, 1 }
 0x48c   : > { %v1875_v1 = vadd.f32 %v1874_v16, %v1873_v19 }
 0x48e   : > { %2197 = vpush %v1875_v1 }
 0x48f   : > { %2199 = vpush %v1943_v51 }
 0x4bf   : > { %s2198_s23 = spop %2197 }
 0x4c0   : > { %v1877_v37 = vstv %s2198_s23  ;;  %s2200_s6 = spop %2199 }
 0x4c1   : > { %1878 = vst [vmem:[%s2714_s14] sm:$0xff] %v1877_v37  ;;  %v1945_v57 = vstv %s2200_s6 }
 0x4c2   : > { %1946 = vst [vmem:[%s2716_s20] sm:$0xff] %v1945_v57 }
 0x4c3 PF: > { %s2159_s11 = sshll.u32 %s2536_s24, 7  ;;  %s1966_s7 = sshll.u32 %s2714_s14, 4  ;;  %s1967_s7 = int_to_ptr.vmem [resolvable:$true] %s1966_s7 }
 0x4c4   : > { %s4171_s28 = scalar_lea.hbm %s4256_s4, %s2159_s11  ;;  %s1948_s8 = scalar_lea.sflag [#allocation8], %s2689_s12 }
 0x4c5   : > { %s2406_s29 = scalar_lea.vmem %s1967_s7, 128  ;;  %s2555_s10 = smov [#allocation7]  }
 0x4c6   : > { %p2407_p7 = scmp.ne.s32.totalorder %s1967_s7, %s2406_s29  ;;  %s2410_s21 = sshll.u32 %s2555_s10, 4  ;;  %s2411_s21 = int_to_ptr.vmem [resolvable:$false] %s2410_s21 }
 0x4c7   : > { %s2412_s9 = scalar_lea.vmem %s2411_s21, 256  ;;  %p2413_p11 = scmp.lt.s32.totalorder %s1967_s7, %s2411_s21 }
 0x4c8   : > { %p2408_p8 = pnand %p2407_p7, %p2666_p10  ;;  %p2414_p13 = scmp.lt.s32.totalorder %s2412_s9, %s2406_s29 }
 0x4ca   : > { %p2409_p9 = pneg %p2408_p8  ;;  %p2415_p0 = por %p2414_p13, %p2413_p11 }
 0x4cc   : > { %p2416_p1 = pnand %p2415_p0, %p2409_p9 }
 0x4ce   : > { %2419 = shalt.err (!%p2416_p1)
}
 0x4cf   : > { %s2420_s14 = scalar_lea.hbm %s4171_s28, 128  ;;  %s2424_s25 = scalar_lea.hbm %s4256_s4, 256 }
 0x4d0   : > { %p2421_p2 = scmp.ne.s32.totalorder %s4171_s28, %s2420_s14  ;;  %p2425_p5 = scmp.lt.u32.totalorder %s4171_s28, %s4256_s4 }
 0x4d1   : > { %p2426_p6 = scmp.lt.u32.totalorder %s2424_s25, %s2420_s14  ;;  %p2428_p8 = scmp.lt.u32.totalorder %s2420_s14, %s4171_s28 }
 0x4d2   : > { %p2422_p3 = pnand %p2421_p2, %p2666_p10 }
 0x4d3   : > { %p2427_p7 = por %p2426_p6, %p2425_p5 }
 0x4d4   : > { %p2423_p4 = pneg %p2422_p3 }
 0x4d5   : > { %p2429_p9 = por %p2428_p8, %p2427_p7 }
 0x4d7   : > { %p2430_p11 = pnand %p2429_p9, %p2423_p4 }
 0x4d9   : > { %2433 = shalt.err (!%p2430_p11)
}
 0x4da   : > { %2201 = dma.vmem_to_hbm [thread:$0]  (%p2666_p10), %s1967_s7, 128, %s4171_s28, %s1948_s8  }
 0x4db   : > { %s4197_s16 = scalar_lea.hbm %s4257_s5, %s2159_s11  ;;  %s1979_s17 = sshll.u32 %s2716_s20, 4  ;;  %s1980_s17 = int_to_ptr.vmem [resolvable:$true] %s1979_s17 }
 0x4dc   : > { %s1953_s29 = scalar_lea.sflag [#allocation10], %s2689_s12  ;;  %s2434_s10 = scalar_lea.vmem %s1980_s17, 128 }
 0x4dd   : > { %p2435_p13 = scmp.ne.s32.totalorder %s1980_s17, %s2434_s10  ;;  %s2556_s21 = smov [#allocation9]  }
 0x4de   : > { %s2438_s9 = sshll.u32 %s2556_s21, 4  ;;  %s2439_s9 = int_to_ptr.vmem [resolvable:$false] %s2438_s9 }
 0x4df   : > { %p2436_p0 = pnand %p2435_p13, %p2666_p10  ;;  %s2440_s14 = scalar_lea.vmem %s2439_s9, 256 }
 0x4e0   : > { %p2441_p2 = scmp.lt.s32.totalorder %s1980_s17, %s2439_s9  ;;  %p2442_p3 = scmp.lt.s32.totalorder %s2440_s14, %s2434_s10 }
 0x4e1   : > { %p2437_p1 = pneg %p2436_p0 }
 0x4e2   : > { %p2443_p4 = por %p2442_p3, %p2441_p2 }
 0x4e4   : > { %p2444_p5 = pnand %p2443_p4, %p2437_p1 }
 0x4e6   : > { %2447 = shalt.err (!%p2444_p5)
}
 0x4e7   : > { %s2448_s20 = scalar_lea.hbm %s4197_s16, 128  ;;  %s2452_s11 = scalar_lea.hbm %s4257_s5, 256 }
 0x4e8   : > { %p2449_p6 = scmp.ne.s32.totalorder %s4197_s16, %s2448_s20  ;;  %p2453_p9 = scmp.lt.u32.totalorder %s4197_s16, %s4257_s5 }
 0x4e9   : > { %p2454_p11 = scmp.lt.u32.totalorder %s2452_s11, %s2448_s20  ;;  %p2456_p0 = scmp.lt.u32.totalorder %s2448_s20, %s4197_s16 }
 0x4ea   : > { %p2450_p7 = pnand %p2449_p6, %p2666_p10 }
 0x4eb   : > { %p2455_p13 = por %p2454_p11, %p2453_p9 }
 0x4ec   : > { %p2451_p8 = pneg %p2450_p7 }
 0x4ed   : > { %p2457_p1 = por %p2456_p0, %p2455_p13 }
 0x4ef   : > { %p2458_p2 = pnand %p2457_p1, %p2451_p8 }
 0x4f1   : > { %2461 = shalt.err (!%p2458_p2)
}
 0x4f2   : > { %2202 = dma.vmem_to_hbm [thread:$0]  (%p2666_p10), %s1980_s17, 128, %s4197_s16, %s1953_s29  }
 0x4f3 PF: > { %p2212_p3 = scmp.ge.s32.totalorder %s2548_s27, 2  ;;  %s1991_s8 = sand.u32 1, %s2512_s18  }
 0x4f4   : > { %s1992_s1 = scalar_lea.sflag [#allocation8], %s1991_s8 }
 0x4f5   : > { %p2206_p4 = pnand %p2212_p3, %p2673_p12 }
 0x4f7   : > { %2503 = dma.done.wait (!%p2206_p4), %s1992_s1, 128  }
 0x4f8   : > { %2505 = vsyncadd (!%p2206_p4), %s1992_s1, 4294967168  ;;  %s2001_s22 = scalar_lea.sflag [#allocation10], %s1991_s8 }
 0x4f9   : > { %2507 = dma.done.wait (!%p2206_p4), %s2001_s22, 128  }
 0x4fa   : > { %2509 = vsyncadd (!%p2206_p4), %s2001_s22, 4294967168  ;;  %s22_s27 = sadd.s32 1, %s2548_s27   ;;  %s4686_s13 = sld [smem:[#allocation13_spill]] }
 0x4fb   : > { %p19_p5 = scmp.ge.s32.totalorder %s22_s27, 8   ;;  %s4687_s20 = sld [smem:[#allocation20_spill]] }
 0x4fc   : > { %s4688_s21 = sld [smem:[#allocation14_spill]]  ;;  %s4689_s22 = sld [smem:[#allocation19_spill]] }
 0x4fd   : > { %s4690_s23 = sld [smem:[#allocation15_spill]]  ;;  %s4691_s24 = sld [smem:[#allocation16_spill]] }
 0x4fe   : > { %s4692_s25 = sld [smem:[#allocation17_spill]]  ;;  %s4693_s26 = sld [smem:[#allocation18_spill]] }
 0x4ff   : > { %s4694_s18 = smov %s2516_s19  ;;  %21 = sbr.rel (!%p19_p5) target bundleno = 10 (0xa), region = 151 }
 0x500   : > { %s4695_s19 = smov %s4686_s13 }
 0x506   :  { %2006 = vsyncpa [#allocation8], 1 }
 0x507   :  { %2008 = vsyncpa [#allocation8 + $0x1], 1 }
 0x508   :  { %2009 = vsyncpa [#allocation10], 1 }
 0x509   :  { %2011 = vsyncpa [#allocation10 + $0x1], 1 }

</bundles_post_ra>
